<compile_context>
chip_gen: v7x
topology: tpu7x:2x2x1
jax: 0.10.0
libtpu: 0.0.40
codegen_flags: <defaults>
</compile_context>

<pallas_src>
import functools

import jax
import jax.numpy as jnp
from jax.experimental import pallas as pl
from jax.experimental.pallas import tpu as pltpu


# ----------------------------------------------------------------------------
# In-kernel helpers (f32 elementwise, bf16 MXU inputs, f32 accumulate)
# ----------------------------------------------------------------------------
def _l2_normalize(x):
    # Keep in f32: v5e has no bf16 VPU/EUP; rsqrt goes to the EUP slot.
    return x * jax.lax.rsqrt(jnp.sum(x * x, axis=-1, keepdims=True) + 1e-12)


def _dot_nt_bf16(a, b):
    # a @ b.T without materializing a transpose (contract last dims of both);
    # bf16 MXU inputs, f32 accumulation.
    return jax.lax.dot_general(
        a.astype(jnp.bfloat16), b.astype(jnp.bfloat16),
        dimension_numbers=(((1,), (1,)), ((), ())),
        preferred_element_type=jnp.float32)


def _infonce_loss(u, it, inv_tau):
    """In-batch InfoNCE; u, it are unnormalized [B, H] f32 embeddings."""
    un = _l2_normalize(u) * inv_tau      # fold 1/tau into the [B, H] operand
    itn = _l2_normalize(it)
    s = _dot_nt_bf16(un, itn)            # [B, B] logits (f32)
    diag = jnp.sum(un * itn, axis=-1, keepdims=True)   # positives, row-wise
    m = jnp.max(s, axis=-1, keepdims=True)
    lse = jnp.log(jnp.sum(jnp.exp(s - m), axis=-1, keepdims=True)) + m
    return jnp.mean(lse - diag)


# ----------------------------------------------------------------------------
# Train kernel: single invocation, V-loop unrolled in-kernel, scalar output
# ----------------------------------------------------------------------------
def _train_kernel(xu_ref, wu_ref, bu_ref, xi_ref, wi_ref, bi_ref, loss_ref,
                  *, inv_tau, reg, num_views):
    fu = None
    fi = None
    ssl = jnp.float32(0.0)
    # num_views is small & static: unrolled loop inside ONE kernel step.
    # Per-view projections never leave vregs/VMEM; no per-step grid overhead.
    for v in range(num_views):
        pu = jnp.dot(xu_ref[v], wu_ref[v],
                     preferred_element_type=jnp.float32) + bu_ref[v]
        pi = jnp.dot(xi_ref[v], wi_ref[v],
                     preferred_element_type=jnp.float32) + bi_ref[v]
        fu = pu if fu is None else fu + pu        # view fusion (sum)
        fi = pi if fi is None else fi + pi
        ssl = ssl + _infonce_loss(pu, pi, inv_tau)   # per-view SSL regularizer
    loss_main = _infonce_loss(fu, fi, inv_tau)
    loss_ref[0, 0] = loss_main + reg * (ssl / num_views)


# ----------------------------------------------------------------------------
# Eval kernel: single concat-K matmul per side, emits the [B, B] score matrix
# ----------------------------------------------------------------------------
def _eval_kernel(xu_ref, wu_ref, bu_ref, xi_ref, wi_ref, bi_ref, scores_ref,
                 *, inv_tau):
    # One K = V*F contraction per side (2 native MXU passes on v6e/v7x)
    # instead of V latency-dominated K=F matmuls.
    fu = jnp.dot(xu_ref[...], wu_ref[...],
                 preferred_element_type=jnp.float32) + bu_ref[...]
    fi = jnp.dot(xi_ref[...], wi_ref[...],
                 preferred_element_type=jnp.float32) + bi_ref[...]
    un = _l2_normalize(fu) * inv_tau
    itn = _l2_normalize(fi)
    scores_ref[...] = _dot_nt_bf16(un, itn)


# ----------------------------------------------------------------------------
# Wrapper
# ----------------------------------------------------------------------------
def ssr2_lastfm_forward(params, user_feats, item_feats, mode="train",
                        tau=0.2, reg_infonce=0.01):
    """user_feats / item_feats: lists of V arrays of shape [B, F]."""
    xu = jnp.stack(user_feats, axis=0).astype(jnp.float32)   # [V, B, Fu]
    xi = jnp.stack(item_feats, axis=0).astype(jnp.float32)   # [V, B, Fi]
    V, B, Fu = xu.shape
    Fi = xi.shape[-1]
    H = params["wu"].shape[-1]
    inv_tau = 1.0 / tau

    # bf16 MXU operands (halves DMA bytes for x / w); biases & epilogue in f32.
    xu_b = xu.astype(jnp.bfloat16)
    xi_b = xi.astype(jnp.bfloat16)
    wu_b = params["wu"].astype(jnp.bfloat16)                  # [V, Fu, H]
    wi_b = params["wi"].astype(jnp.bfloat16)                  # [V, Fi, H]
    bu = params["bu"].reshape(V, 1, H).astype(jnp.float32)
    bi = params["bi"].reshape(V, 1, H).astype(jnp.float32)

    vmem = pl.BlockSpec(memory_space=pltpu.MemorySpace.VMEM)  # whole array, resident

    if mode == "train":
        kern = functools.partial(_train_kernel, inv_tau=inv_tau,
                                 reg=reg_infonce, num_views=V)
        out = pl.pallas_call(
            kern,
            out_shape=jax.ShapeDtypeStruct((1, 1), jnp.float32),
            in_specs=[vmem] * 6,
            out_specs=pl.BlockSpec(memory_space=pltpu.MemorySpace.SMEM),
        )(xu_b, wu_b, bu, xi_b, wi_b, bi)
        return out[0, 0]

    # Eval: fused embedding = sum_v(x_v @ w_v) + sum_v(b_v)
    #     = concat_v(x_v) @ stack_v(w_v)  (single K = V*F contraction).
    xu_cat = jnp.transpose(xu_b, (1, 0, 2)).reshape(B, V * Fu)
    xi_cat = jnp.transpose(xi_b, (1, 0, 2)).reshape(B, V * Fi)
    wu_cat = wu_b.reshape(V * Fu, H)
    wi_cat = wi_b.reshape(V * Fi, H)
    bu_sum = jnp.sum(bu, axis=0)                              # [1, H]
    bi_sum = jnp.sum(bi, axis=0)                              # [1, H]

    kern = functools.partial(_eval_kernel, inv_tau=inv_tau)
    return pl.pallas_call(
        kern,
        out_shape=jax.ShapeDtypeStruct((B, B), jnp.float32),
        in_specs=[vmem] * 6,
        out_specs=vmem,
    )(xu_cat, wu_cat, bu_sum, xi_cat, wi_cat, bi_sum)


# ----------------------------------------------------------------------------
# Params
# ----------------------------------------------------------------------------
def init_params(key, view_nums, feat_dim_user, feat_dim_item, hidden_dim):
    k1, k2, k3, k4 = jax.random.split(key, 4)
    scale = 0.1
    return {
        "wu": scale * jax.random.normal(k1, (view_nums, feat_dim_user, hidden_dim), jnp.float32),
        "bu": scale * jax.random.normal(k2, (view_nums, hidden_dim), jnp.float32),
        "wi": scale * jax.random.normal(k3, (view_nums, feat_dim_item, hidden_dim), jnp.float32),
        "bi": scale * jax.random.normal(k4, (view_nums, hidden_dim), jnp.float32),
    }


# ----------------------------------------------------------------------------
# Pure-JAX f32 reference (correctness check)
# ----------------------------------------------------------------------------
def _ref_infonce(u, it, tau):
    u = u / jnp.sqrt(jnp.sum(u * u, axis=-1, keepdims=True) + 1e-12)
    it = it / jnp.sqrt(jnp.sum(it * it, axis=-1, keepdims=True) + 1e-12)
    s = (u @ it.T) / tau
    lse = jax.scipy.special.logsumexp(s, axis=-1)
    loss = jnp.mean(lse - jnp.diag(s))
    return s, loss


def ssr2_lastfm_forward_ref(params, user_feats, item_feats, mode="train",
                            tau=0.2, reg_infonce=0.01):
    xu = jnp.stack(user_feats, axis=0).astype(jnp.float32)
    xi = jnp.stack(item_feats, axis=0).astype(jnp.float32)
    proj_u = jnp.einsum("vbf,vfh->vbh", xu, params["wu"]) + params["bu"][:, None, :]
    proj_i = jnp.einsum("vbf,vfh->vbh", xi, params["wi"]) + params["bi"][:, None, :]
    fused_u = jnp.sum(proj_u, axis=0)
    fused_i = jnp.sum(proj_i, axis=0)
    scores, loss_main = _ref_infonce(fused_u, fused_i, tau)
    if mode != "train":
        return scores
    V = proj_u.shape[0]
    ssl = jnp.mean(jnp.stack([_ref_infonce(proj_u[v], proj_i[v], tau)[1]
                              for v in range(V)]))
    return loss_main + reg_infonce * ssl


if __name__ == "__main__":
    # Small but lane-dense demo shapes consistent with the module:
    # view_nums=4 feature views, batch=8, per-view feature dim 128, hidden 128.
    V, B, F, H = 4, 8, 128, 128
    TAU, REG = 0.2, 0.01

    key = jax.random.PRNGKey(0)
    kp, ku, ki = jax.random.split(key, 3)
    params = init_params(kp, V, F, F, H)

    uks = jax.random.split(ku, V)
    iks = jax.random.split(ki, V)
    user_feats = [jax.random.normal(uks[v], (B, F), jnp.float32) for v in range(V)]
    item_feats = [jax.random.normal(iks[v], (B, F), jnp.float32) for v in range(V)]

    # train mode -> scalar loss (single fused pallas_call, no grid)
    loss = ssr2_lastfm_forward(params, user_feats, item_feats, mode="train",
                               tau=TAU, reg_infonce=REG)
    loss = jax.block_until_ready(loss)

    # eval mode -> [B, B] score matrix (single fused pallas_call, concat-K)
    scores = ssr2_lastfm_forward(params, user_feats, item_feats, mode="eval",
                                 tau=TAU, reg_infonce=REG)
    scores = jax.block_until_ready(scores)

    # Correctness vs pure-JAX f32 reference.  Tolerance accounts for bf16 MXU
    # operands (f32 accumulate) in the kernel vs the all-f32 reference.
    loss_ref = ssr2_lastfm_forward_ref(params, user_feats, item_feats, "train",
                                       TAU, REG)
    scores_ref = ssr2_lastfm_forward_ref(params, user_feats, item_feats, "eval",
                                         TAU, REG)
    assert bool(jnp.isfinite(loss)), loss
    assert jnp.allclose(loss, loss_ref, rtol=5e-2, atol=5e-2), (loss, loss_ref)
    assert jnp.allclose(scores, scores_ref, rtol=5e-2, atol=5e-2)

    print("KERNEL_OK")
</pallas_src>

<mosaic_0001>
module attributes {stable_mosaic.version = 11 : i64} {
  func.func @_train_kernel(%arg0: memref<4x8x128xbf16, #tpu.memory_space<vmem>>, %arg1: memref<4x128x128xbf16, #tpu.memory_space<vmem>>, %arg2: memref<4x1x128xf32, #tpu.memory_space<vmem>>, %arg3: memref<4x8x128xbf16, #tpu.memory_space<vmem>>, %arg4: memref<4x128x128xbf16, #tpu.memory_space<vmem>>, %arg5: memref<4x1x128xf32, #tpu.memory_space<vmem>>, %arg6: memref<1x1xf32, #tpu.memory_space<smem>>) attributes {dimension_semantics = [], scalar_prefetch = 0 : i64, scratch_operands = 0 : i64, tpu.core_type = #tpu.core_type<tc>} {
    %c0 = arith.constant 0 : index
    %c0_0 = arith.constant 0 : index
    %c0_1 = arith.constant 0 : index
    %0 = vector.load %arg0[%c0, %c0_0, %c0_1] : memref<4x8x128xbf16, #tpu.memory_space<vmem>>, vector<1x8x128xbf16>
    %1 = vector.shape_cast %0 : vector<1x8x128xbf16> to vector<8x128xbf16>
    %c0_2 = arith.constant 0 : index
    %c0_3 = arith.constant 0 : index
    %c0_4 = arith.constant 0 : index
    %2 = vector.load %arg1[%c0_2, %c0_3, %c0_4] : memref<4x128x128xbf16, #tpu.memory_space<vmem>>, vector<1x128x128xbf16>
    %3 = vector.shape_cast %2 : vector<1x128x128xbf16> to vector<128x128xbf16>
    %cst = arith.constant dense<0.000000e+00> : vector<8x128xf32>
    %4 = tpu.matmul %1, %3, %cst {dimension_numbers = #tpu.dot_dimension_numbers<[1], [0], [0], [1], [0, 0, 1, 1], [], []>} : vector<8x128xbf16>, vector<128x128xbf16>, vector<8x128xf32> -> vector<8x128xf32>
    %c0_5 = arith.constant 0 : index
    %c0_6 = arith.constant 0 : index
    %c0_7 = arith.constant 0 : index
    %5 = vector.load %arg2[%c0_5, %c0_6, %c0_7] : memref<4x1x128xf32, #tpu.memory_space<vmem>>, vector<1x1x128xf32>
    %6 = vector.shape_cast %5 : vector<1x1x128xf32> to vector<1x128xf32>
    %7 = vector.broadcast %6 : vector<1x128xf32> to vector<8x128xf32>
    %8 = arith.addf %4, %7 : vector<8x128xf32>
    %c0_8 = arith.constant 0 : index
    %c0_9 = arith.constant 0 : index
    %c0_10 = arith.constant 0 : index
    %9 = vector.load %arg3[%c0_8, %c0_9, %c0_10] : memref<4x8x128xbf16, #tpu.memory_space<vmem>>, vector<1x8x128xbf16>
    %10 = vector.shape_cast %9 : vector<1x8x128xbf16> to vector<8x128xbf16>
    %c0_11 = arith.constant 0 : index
    %c0_12 = arith.constant 0 : index
    %c0_13 = arith.constant 0 : index
    %11 = vector.load %arg4[%c0_11, %c0_12, %c0_13] : memref<4x128x128xbf16, #tpu.memory_space<vmem>>, vector<1x128x128xbf16>
    %12 = vector.shape_cast %11 : vector<1x128x128xbf16> to vector<128x128xbf16>
    %cst_14 = arith.constant dense<0.000000e+00> : vector<8x128xf32>
    %13 = tpu.matmul %10, %12, %cst_14 {dimension_numbers = #tpu.dot_dimension_numbers<[1], [0], [0], [1], [0, 0, 1, 1], [], []>} : vector<8x128xbf16>, vector<128x128xbf16>, vector<8x128xf32> -> vector<8x128xf32>
    %c0_15 = arith.constant 0 : index
    %c0_16 = arith.constant 0 : index
    %c0_17 = arith.constant 0 : index
    %14 = vector.load %arg5[%c0_15, %c0_16, %c0_17] : memref<4x1x128xf32, #tpu.memory_space<vmem>>, vector<1x1x128xf32>
    %15 = vector.shape_cast %14 : vector<1x1x128xf32> to vector<1x128xf32>
    %16 = vector.broadcast %15 : vector<1x128xf32> to vector<8x128xf32>
    %17 = arith.addf %13, %16 : vector<8x128xf32>
    %18 = arith.mulf %8, %8 : vector<8x128xf32>
    %cst_18 = arith.constant dense<0.000000e+00> : vector<8xf32>
    %19 = vector.multi_reduction <add>, %18, %cst_18 [1] : vector<8x128xf32> to vector<8xf32>
    %20 = vector.shape_cast %19 : vector<8xf32> to vector<8x1xf32>
    %cst_19 = arith.constant 9.99999996E-13 : f32
    %21 = vector.broadcast %cst_19 : f32 to vector<8x1xf32>
    %22 = arith.addf %20, %21 : vector<8x1xf32>
    %23 = math.rsqrt %22 : vector<8x1xf32>
    %24 = vector.broadcast %23 : vector<8x1xf32> to vector<8x128xf32>
    %25 = arith.mulf %8, %24 : vector<8x128xf32>
    %cst_20 = arith.constant 5.000000e+00 : f32
    %26 = vector.broadcast %cst_20 : f32 to vector<8x128xf32>
    %27 = arith.mulf %25, %26 : vector<8x128xf32>
    %28 = arith.mulf %17, %17 : vector<8x128xf32>
    %cst_21 = arith.constant dense<0.000000e+00> : vector<8xf32>
    %29 = vector.multi_reduction <add>, %28, %cst_21 [1] : vector<8x128xf32> to vector<8xf32>
    %30 = vector.shape_cast %29 : vector<8xf32> to vector<8x1xf32>
    %cst_22 = arith.constant 9.99999996E-13 : f32
    %31 = vector.broadcast %cst_22 : f32 to vector<8x1xf32>
    %32 = arith.addf %30, %31 : vector<8x1xf32>
    %33 = math.rsqrt %32 : vector<8x1xf32>
    %34 = vector.broadcast %33 : vector<8x1xf32> to vector<8x128xf32>
    %35 = arith.mulf %17, %34 : vector<8x128xf32>
    %36 = arith.truncf %27 : vector<8x128xf32> to vector<8x128xbf16>
    %37 = arith.truncf %35 : vector<8x128xf32> to vector<8x128xbf16>
    %cst_23 = arith.constant dense<0.000000e+00> : vector<8x8xf32>
    %38 = tpu.matmul %36, %37, %cst_23 {dimension_numbers = #tpu.dot_dimension_numbers<[1], [1], [0], [0], [0, 0, 1, 0], [], []>} : vector<8x128xbf16>, vector<8x128xbf16>, vector<8x8xf32> -> vector<8x8xf32>
    %39 = arith.mulf %27, %35 : vector<8x128xf32>
    %cst_24 = arith.constant dense<0.000000e+00> : vector<8xf32>
    %40 = vector.multi_reduction <add>, %39, %cst_24 [1] : vector<8x128xf32> to vector<8xf32>
    %41 = vector.shape_cast %40 : vector<8xf32> to vector<8x1xf32>
    %cst_25 = arith.constant dense<0xFF800000> : vector<8xf32>
    %42 = vector.multi_reduction <maximumf>, %38, %cst_25 [1] : vector<8x8xf32> to vector<8xf32>
    %43 = vector.shape_cast %42 : vector<8xf32> to vector<8x1xf32>
    %44 = vector.broadcast %43 : vector<8x1xf32> to vector<8x8xf32>
    %45 = arith.subf %38, %44 : vector<8x8xf32>
    %46 = math.exp %45 : vector<8x8xf32>
    %cst_26 = arith.constant dense<0.000000e+00> : vector<8xf32>
    %47 = vector.multi_reduction <add>, %46, %cst_26 [1] : vector<8x8xf32> to vector<8xf32>
    %48 = vector.shape_cast %47 : vector<8xf32> to vector<8x1xf32>
    %49 = math.log %48 : vector<8x1xf32>
    %50 = arith.addf %49, %43 : vector<8x1xf32>
    %51 = arith.subf %50, %41 : vector<8x1xf32>
    %52 = vector.shape_cast %51 : vector<8x1xf32> to vector<1x8x1xf32>
    %cst_27 = arith.constant dense<0.000000e+00> : vector<1xf32>
    %53 = vector.multi_reduction <add>, %52, %cst_27 [1, 2] : vector<1x8x1xf32> to vector<1xf32>
    %54 = vector.shape_cast %53 : vector<1xf32> to vector<1x1x1xf32>
    %55 = vector.extract %54[0, 0, 0] : f32 from vector<1x1x1xf32>
    %cst_28 = arith.constant 8.000000e+00 : f32
    %56 = arith.divf %55, %cst_28 : f32
    %cst_29 = arith.constant 0.000000e+00 : f32
    %57 = arith.addf %cst_29, %56 : f32
    %c1 = arith.constant 1 : index
    %c0_30 = arith.constant 0 : index
    %c0_31 = arith.constant 0 : index
    %58 = vector.load %arg0[%c1, %c0_30, %c0_31] : memref<4x8x128xbf16, #tpu.memory_space<vmem>>, vector<1x8x128xbf16>
    %59 = vector.shape_cast %58 : vector<1x8x128xbf16> to vector<8x128xbf16>
    %c1_32 = arith.constant 1 : index
    %c0_33 = arith.constant 0 : index
    %c0_34 = arith.constant 0 : index
    %60 = vector.load %arg1[%c1_32, %c0_33, %c0_34] : memref<4x128x128xbf16, #tpu.memory_space<vmem>>, vector<1x128x128xbf16>
    %61 = vector.shape_cast %60 : vector<1x128x128xbf16> to vector<128x128xbf16>
    %cst_35 = arith.constant dense<0.000000e+00> : vector<8x128xf32>
    %62 = tpu.matmul %59, %61, %cst_35 {dimension_numbers = #tpu.dot_dimension_numbers<[1], [0], [0], [1], [0, 0, 1, 1], [], []>} : vector<8x128xbf16>, vector<128x128xbf16>, vector<8x128xf32> -> vector<8x128xf32>
    %c1_36 = arith.constant 1 : index
    %c0_37 = arith.constant 0 : index
    %c0_38 = arith.constant 0 : index
    %63 = vector.load %arg2[%c1_36, %c0_37, %c0_38] : memref<4x1x128xf32, #tpu.memory_space<vmem>>, vector<1x1x128xf32>
    %64 = vector.shape_cast %63 : vector<1x1x128xf32> to vector<1x128xf32>
    %65 = vector.broadcast %64 : vector<1x128xf32> to vector<8x128xf32>
    %66 = arith.addf %62, %65 : vector<8x128xf32>
    %c1_39 = arith.constant 1 : index
    %c0_40 = arith.constant 0 : index
    %c0_41 = arith.constant 0 : index
    %67 = vector.load %arg3[%c1_39, %c0_40, %c0_41] : memref<4x8x128xbf16, #tpu.memory_space<vmem>>, vector<1x8x128xbf16>
    %68 = vector.shape_cast %67 : vector<1x8x128xbf16> to vector<8x128xbf16>
    %c1_42 = arith.constant 1 : index
    %c0_43 = arith.constant 0 : index
    %c0_44 = arith.constant 0 : index
    %69 = vector.load %arg4[%c1_42, %c0_43, %c0_44] : memref<4x128x128xbf16, #tpu.memory_space<vmem>>, vector<1x128x128xbf16>
    %70 = vector.shape_cast %69 : vector<1x128x128xbf16> to vector<128x128xbf16>
    %cst_45 = arith.constant dense<0.000000e+00> : vector<8x128xf32>
    %71 = tpu.matmul %68, %70, %cst_45 {dimension_numbers = #tpu.dot_dimension_numbers<[1], [0], [0], [1], [0, 0, 1, 1], [], []>} : vector<8x128xbf16>, vector<128x128xbf16>, vector<8x128xf32> -> vector<8x128xf32>
    %c1_46 = arith.constant 1 : index
    %c0_47 = arith.constant 0 : index
    %c0_48 = arith.constant 0 : index
    %72 = vector.load %arg5[%c1_46, %c0_47, %c0_48] : memref<4x1x128xf32, #tpu.memory_space<vmem>>, vector<1x1x128xf32>
    %73 = vector.shape_cast %72 : vector<1x1x128xf32> to vector<1x128xf32>
    %74 = vector.broadcast %73 : vector<1x128xf32> to vector<8x128xf32>
    %75 = arith.addf %71, %74 : vector<8x128xf32>
    %76 = arith.addf %8, %66 : vector<8x128xf32>
    %77 = arith.addf %17, %75 : vector<8x128xf32>
    %78 = arith.mulf %66, %66 : vector<8x128xf32>
    %cst_49 = arith.constant dense<0.000000e+00> : vector<8xf32>
    %79 = vector.multi_reduction <add>, %78, %cst_49 [1] : vector<8x128xf32> to vector<8xf32>
    %80 = vector.shape_cast %79 : vector<8xf32> to vector<8x1xf32>
    %cst_50 = arith.constant 9.99999996E-13 : f32
    %81 = vector.broadcast %cst_50 : f32 to vector<8x1xf32>
    %82 = arith.addf %80, %81 : vector<8x1xf32>
    %83 = math.rsqrt %82 : vector<8x1xf32>
    %84 = vector.broadcast %83 : vector<8x1xf32> to vector<8x128xf32>
    %85 = arith.mulf %66, %84 : vector<8x128xf32>
    %cst_51 = arith.constant 5.000000e+00 : f32
    %86 = vector.broadcast %cst_51 : f32 to vector<8x128xf32>
    %87 = arith.mulf %85, %86 : vector<8x128xf32>
    %88 = arith.mulf %75, %75 : vector<8x128xf32>
    %cst_52 = arith.constant dense<0.000000e+00> : vector<8xf32>
    %89 = vector.multi_reduction <add>, %88, %cst_52 [1] : vector<8x128xf32> to vector<8xf32>
    %90 = vector.shape_cast %89 : vector<8xf32> to vector<8x1xf32>
    %cst_53 = arith.constant 9.99999996E-13 : f32
    %91 = vector.broadcast %cst_53 : f32 to vector<8x1xf32>
    %92 = arith.addf %90, %91 : vector<8x1xf32>
    %93 = math.rsqrt %92 : vector<8x1xf32>
    %94 = vector.broadcast %93 : vector<8x1xf32> to vector<8x128xf32>
    %95 = arith.mulf %75, %94 : vector<8x128xf32>
    %96 = arith.truncf %87 : vector<8x128xf32> to vector<8x128xbf16>
    %97 = arith.truncf %95 : vector<8x128xf32> to vector<8x128xbf16>
    %cst_54 = arith.constant dense<0.000000e+00> : vector<8x8xf32>
    %98 = tpu.matmul %96, %97, %cst_54 {dimension_numbers = #tpu.dot_dimension_numbers<[1], [1], [0], [0], [0, 0, 1, 0], [], []>} : vector<8x128xbf16>, vector<8x128xbf16>, vector<8x8xf32> -> vector<8x8xf32>
    %99 = arith.mulf %87, %95 : vector<8x128xf32>
    %cst_55 = arith.constant dense<0.000000e+00> : vector<8xf32>
    %100 = vector.multi_reduction <add>, %99, %cst_55 [1] : vector<8x128xf32> to vector<8xf32>
    %101 = vector.shape_cast %100 : vector<8xf32> to vector<8x1xf32>
    %cst_56 = arith.constant dense<0xFF800000> : vector<8xf32>
    %102 = vector.multi_reduction <maximumf>, %98, %cst_56 [1] : vector<8x8xf32> to vector<8xf32>
    %103 = vector.shape_cast %102 : vector<8xf32> to vector<8x1xf32>
    %104 = vector.broadcast %103 : vector<8x1xf32> to vector<8x8xf32>
    %105 = arith.subf %98, %104 : vector<8x8xf32>
    %106 = math.exp %105 : vector<8x8xf32>
    %cst_57 = arith.constant dense<0.000000e+00> : vector<8xf32>
    %107 = vector.multi_reduction <add>, %106, %cst_57 [1] : vector<8x8xf32> to vector<8xf32>
    %108 = vector.shape_cast %107 : vector<8xf32> to vector<8x1xf32>
    %109 = math.log %108 : vector<8x1xf32>
    %110 = arith.addf %109, %103 : vector<8x1xf32>
    %111 = arith.subf %110, %101 : vector<8x1xf32>
    %112 = vector.shape_cast %111 : vector<8x1xf32> to vector<1x8x1xf32>
    %cst_58 = arith.constant dense<0.000000e+00> : vector<1xf32>
    %113 = vector.multi_reduction <add>, %112, %cst_58 [1, 2] : vector<1x8x1xf32> to vector<1xf32>
    %114 = vector.shape_cast %113 : vector<1xf32> to vector<1x1x1xf32>
    %115 = vector.extract %114[0, 0, 0] : f32 from vector<1x1x1xf32>
    %cst_59 = arith.constant 8.000000e+00 : f32
    %116 = arith.divf %115, %cst_59 : f32
    %117 = arith.addf %57, %116 : f32
    %c2 = arith.constant 2 : index
    %c0_60 = arith.constant 0 : index
    %c0_61 = arith.constant 0 : index
    %118 = vector.load %arg0[%c2, %c0_60, %c0_61] : memref<4x8x128xbf16, #tpu.memory_space<vmem>>, vector<1x8x128xbf16>
    %119 = vector.shape_cast %118 : vector<1x8x128xbf16> to vector<8x128xbf16>
    %c2_62 = arith.constant 2 : index
    %c0_63 = arith.constant 0 : index
    %c0_64 = arith.constant 0 : index
    %120 = vector.load %arg1[%c2_62, %c0_63, %c0_64] : memref<4x128x128xbf16, #tpu.memory_space<vmem>>, vector<1x128x128xbf16>
    %121 = vector.shape_cast %120 : vector<1x128x128xbf16> to vector<128x128xbf16>
    %cst_65 = arith.constant dense<0.000000e+00> : vector<8x128xf32>
    %122 = tpu.matmul %119, %121, %cst_65 {dimension_numbers = #tpu.dot_dimension_numbers<[1], [0], [0], [1], [0, 0, 1, 1], [], []>} : vector<8x128xbf16>, vector<128x128xbf16>, vector<8x128xf32> -> vector<8x128xf32>
    %c2_66 = arith.constant 2 : index
    %c0_67 = arith.constant 0 : index
    %c0_68 = arith.constant 0 : index
    %123 = vector.load %arg2[%c2_66, %c0_67, %c0_68] : memref<4x1x128xf32, #tpu.memory_space<vmem>>, vector<1x1x128xf32>
    %124 = vector.shape_cast %123 : vector<1x1x128xf32> to vector<1x128xf32>
    %125 = vector.broadcast %124 : vector<1x128xf32> to vector<8x128xf32>
    %126 = arith.addf %122, %125 : vector<8x128xf32>
    %c2_69 = arith.constant 2 : index
    %c0_70 = arith.constant 0 : index
    %c0_71 = arith.constant 0 : index
    %127 = vector.load %arg3[%c2_69, %c0_70, %c0_71] : memref<4x8x128xbf16, #tpu.memory_space<vmem>>, vector<1x8x128xbf16>
    %128 = vector.shape_cast %127 : vector<1x8x128xbf16> to vector<8x128xbf16>
    %c2_72 = arith.constant 2 : index
    %c0_73 = arith.constant 0 : index
    %c0_74 = arith.constant 0 : index
    %129 = vector.load %arg4[%c2_72, %c0_73, %c0_74] : memref<4x128x128xbf16, #tpu.memory_space<vmem>>, vector<1x128x128xbf16>
    %130 = vector.shape_cast %129 : vector<1x128x128xbf16> to vector<128x128xbf16>
    %cst_75 = arith.constant dense<0.000000e+00> : vector<8x128xf32>
    %131 = tpu.matmul %128, %130, %cst_75 {dimension_numbers = #tpu.dot_dimension_numbers<[1], [0], [0], [1], [0, 0, 1, 1], [], []>} : vector<8x128xbf16>, vector<128x128xbf16>, vector<8x128xf32> -> vector<8x128xf32>
    %c2_76 = arith.constant 2 : index
    %c0_77 = arith.constant 0 : index
    %c0_78 = arith.constant 0 : index
    %132 = vector.load %arg5[%c2_76, %c0_77, %c0_78] : memref<4x1x128xf32, #tpu.memory_space<vmem>>, vector<1x1x128xf32>
    %133 = vector.shape_cast %132 : vector<1x1x128xf32> to vector<1x128xf32>
    %134 = vector.broadcast %133 : vector<1x128xf32> to vector<8x128xf32>
    %135 = arith.addf %131, %134 : vector<8x128xf32>
    %136 = arith.addf %76, %126 : vector<8x128xf32>
    %137 = arith.addf %77, %135 : vector<8x128xf32>
    %138 = arith.mulf %126, %126 : vector<8x128xf32>
    %cst_79 = arith.constant dense<0.000000e+00> : vector<8xf32>
    %139 = vector.multi_reduction <add>, %138, %cst_79 [1] : vector<8x128xf32> to vector<8xf32>
    %140 = vector.shape_cast %139 : vector<8xf32> to vector<8x1xf32>
    %cst_80 = arith.constant 9.99999996E-13 : f32
    %141 = vector.broadcast %cst_80 : f32 to vector<8x1xf32>
    %142 = arith.addf %140, %141 : vector<8x1xf32>
    %143 = math.rsqrt %142 : vector<8x1xf32>
    %144 = vector.broadcast %143 : vector<8x1xf32> to vector<8x128xf32>
    %145 = arith.mulf %126, %144 : vector<8x128xf32>
    %cst_81 = arith.constant 5.000000e+00 : f32
    %146 = vector.broadcast %cst_81 : f32 to vector<8x128xf32>
    %147 = arith.mulf %145, %146 : vector<8x128xf32>
    %148 = arith.mulf %135, %135 : vector<8x128xf32>
    %cst_82 = arith.constant dense<0.000000e+00> : vector<8xf32>
    %149 = vector.multi_reduction <add>, %148, %cst_82 [1] : vector<8x128xf32> to vector<8xf32>
    %150 = vector.shape_cast %149 : vector<8xf32> to vector<8x1xf32>
    %cst_83 = arith.constant 9.99999996E-13 : f32
    %151 = vector.broadcast %cst_83 : f32 to vector<8x1xf32>
    %152 = arith.addf %150, %151 : vector<8x1xf32>
    %153 = math.rsqrt %152 : vector<8x1xf32>
    %154 = vector.broadcast %153 : vector<8x1xf32> to vector<8x128xf32>
    %155 = arith.mulf %135, %154 : vector<8x128xf32>
    %156 = arith.truncf %147 : vector<8x128xf32> to vector<8x128xbf16>
    %157 = arith.truncf %155 : vector<8x128xf32> to vector<8x128xbf16>
    %cst_84 = arith.constant dense<0.000000e+00> : vector<8x8xf32>
    %158 = tpu.matmul %156, %157, %cst_84 {dimension_numbers = #tpu.dot_dimension_numbers<[1], [1], [0], [0], [0, 0, 1, 0], [], []>} : vector<8x128xbf16>, vector<8x128xbf16>, vector<8x8xf32> -> vector<8x8xf32>
    %159 = arith.mulf %147, %155 : vector<8x128xf32>
    %cst_85 = arith.constant dense<0.000000e+00> : vector<8xf32>
    %160 = vector.multi_reduction <add>, %159, %cst_85 [1] : vector<8x128xf32> to vector<8xf32>
    %161 = vector.shape_cast %160 : vector<8xf32> to vector<8x1xf32>
    %cst_86 = arith.constant dense<0xFF800000> : vector<8xf32>
    %162 = vector.multi_reduction <maximumf>, %158, %cst_86 [1] : vector<8x8xf32> to vector<8xf32>
    %163 = vector.shape_cast %162 : vector<8xf32> to vector<8x1xf32>
    %164 = vector.broadcast %163 : vector<8x1xf32> to vector<8x8xf32>
    %165 = arith.subf %158, %164 : vector<8x8xf32>
    %166 = math.exp %165 : vector<8x8xf32>
    %cst_87 = arith.constant dense<0.000000e+00> : vector<8xf32>
    %167 = vector.multi_reduction <add>, %166, %cst_87 [1] : vector<8x8xf32> to vector<8xf32>
    %168 = vector.shape_cast %167 : vector<8xf32> to vector<8x1xf32>
    %169 = math.log %168 : vector<8x1xf32>
    %170 = arith.addf %169, %163 : vector<8x1xf32>
    %171 = arith.subf %170, %161 : vector<8x1xf32>
    %172 = vector.shape_cast %171 : vector<8x1xf32> to vector<1x8x1xf32>
    %cst_88 = arith.constant dense<0.000000e+00> : vector<1xf32>
    %173 = vector.multi_reduction <add>, %172, %cst_88 [1, 2] : vector<1x8x1xf32> to vector<1xf32>
    %174 = vector.shape_cast %173 : vector<1xf32> to vector<1x1x1xf32>
    %175 = vector.extract %174[0, 0, 0] : f32 from vector<1x1x1xf32>
    %cst_89 = arith.constant 8.000000e+00 : f32
    %176 = arith.divf %175, %cst_89 : f32
    %177 = arith.addf %117, %176 : f32
    %c3 = arith.constant 3 : index
    %c0_90 = arith.constant 0 : index
    %c0_91 = arith.constant 0 : index
    %178 = vector.load %arg0[%c3, %c0_90, %c0_91] : memref<4x8x128xbf16, #tpu.memory_space<vmem>>, vector<1x8x128xbf16>
    %179 = vector.shape_cast %178 : vector<1x8x128xbf16> to vector<8x128xbf16>
    %c3_92 = arith.constant 3 : index
    %c0_93 = arith.constant 0 : index
    %c0_94 = arith.constant 0 : index
    %180 = vector.load %arg1[%c3_92, %c0_93, %c0_94] : memref<4x128x128xbf16, #tpu.memory_space<vmem>>, vector<1x128x128xbf16>
    %181 = vector.shape_cast %180 : vector<1x128x128xbf16> to vector<128x128xbf16>
    %cst_95 = arith.constant dense<0.000000e+00> : vector<8x128xf32>
    %182 = tpu.matmul %179, %181, %cst_95 {dimension_numbers = #tpu.dot_dimension_numbers<[1], [0], [0], [1], [0, 0, 1, 1], [], []>} : vector<8x128xbf16>, vector<128x128xbf16>, vector<8x128xf32> -> vector<8x128xf32>
    %c3_96 = arith.constant 3 : index
    %c0_97 = arith.constant 0 : index
    %c0_98 = arith.constant 0 : index
    %183 = vector.load %arg2[%c3_96, %c0_97, %c0_98] : memref<4x1x128xf32, #tpu.memory_space<vmem>>, vector<1x1x128xf32>
    %184 = vector.shape_cast %183 : vector<1x1x128xf32> to vector<1x128xf32>
    %185 = vector.broadcast %184 : vector<1x128xf32> to vector<8x128xf32>
    %186 = arith.addf %182, %185 : vector<8x128xf32>
    %c3_99 = arith.constant 3 : index
    %c0_100 = arith.constant 0 : index
    %c0_101 = arith.constant 0 : index
    %187 = vector.load %arg3[%c3_99, %c0_100, %c0_101] : memref<4x8x128xbf16, #tpu.memory_space<vmem>>, vector<1x8x128xbf16>
    %188 = vector.shape_cast %187 : vector<1x8x128xbf16> to vector<8x128xbf16>
    %c3_102 = arith.constant 3 : index
    %c0_103 = arith.constant 0 : index
    %c0_104 = arith.constant 0 : index
    %189 = vector.load %arg4[%c3_102, %c0_103, %c0_104] : memref<4x128x128xbf16, #tpu.memory_space<vmem>>, vector<1x128x128xbf16>
    %190 = vector.shape_cast %189 : vector<1x128x128xbf16> to vector<128x128xbf16>
    %cst_105 = arith.constant dense<0.000000e+00> : vector<8x128xf32>
    %191 = tpu.matmul %188, %190, %cst_105 {dimension_numbers = #tpu.dot_dimension_numbers<[1], [0], [0], [1], [0, 0, 1, 1], [], []>} : vector<8x128xbf16>, vector<128x128xbf16>, vector<8x128xf32> -> vector<8x128xf32>
    %c3_106 = arith.constant 3 : index
    %c0_107 = arith.constant 0 : index
    %c0_108 = arith.constant 0 : index
    %192 = vector.load %arg5[%c3_106, %c0_107, %c0_108] : memref<4x1x128xf32, #tpu.memory_space<vmem>>, vector<1x1x128xf32>
    %193 = vector.shape_cast %192 : vector<1x1x128xf32> to vector<1x128xf32>
    %194 = vector.broadcast %193 : vector<1x128xf32> to vector<8x128xf32>
    %195 = arith.addf %191, %194 : vector<8x128xf32>
    %196 = arith.addf %136, %186 : vector<8x128xf32>
    %197 = arith.addf %137, %195 : vector<8x128xf32>
    %198 = arith.mulf %186, %186 : vector<8x128xf32>
    %cst_109 = arith.constant dense<0.000000e+00> : vector<8xf32>
    %199 = vector.multi_reduction <add>, %198, %cst_109 [1] : vector<8x128xf32> to vector<8xf32>
    %200 = vector.shape_cast %199 : vector<8xf32> to vector<8x1xf32>
    %cst_110 = arith.constant 9.99999996E-13 : f32
    %201 = vector.broadcast %cst_110 : f32 to vector<8x1xf32>
    %202 = arith.addf %200, %201 : vector<8x1xf32>
    %203 = math.rsqrt %202 : vector<8x1xf32>
    %204 = vector.broadcast %203 : vector<8x1xf32> to vector<8x128xf32>
    %205 = arith.mulf %186, %204 : vector<8x128xf32>
    %cst_111 = arith.constant 5.000000e+00 : f32
    %206 = vector.broadcast %cst_111 : f32 to vector<8x128xf32>
    %207 = arith.mulf %205, %206 : vector<8x128xf32>
    %208 = arith.mulf %195, %195 : vector<8x128xf32>
    %cst_112 = arith.constant dense<0.000000e+00> : vector<8xf32>
    %209 = vector.multi_reduction <add>, %208, %cst_112 [1] : vector<8x128xf32> to vector<8xf32>
    %210 = vector.shape_cast %209 : vector<8xf32> to vector<8x1xf32>
    %cst_113 = arith.constant 9.99999996E-13 : f32
    %211 = vector.broadcast %cst_113 : f32 to vector<8x1xf32>
    %212 = arith.addf %210, %211 : vector<8x1xf32>
    %213 = math.rsqrt %212 : vector<8x1xf32>
    %214 = vector.broadcast %213 : vector<8x1xf32> to vector<8x128xf32>
    %215 = arith.mulf %195, %214 : vector<8x128xf32>
    %216 = arith.truncf %207 : vector<8x128xf32> to vector<8x128xbf16>
    %217 = arith.truncf %215 : vector<8x128xf32> to vector<8x128xbf16>
    %cst_114 = arith.constant dense<0.000000e+00> : vector<8x8xf32>
    %218 = tpu.matmul %216, %217, %cst_114 {dimension_numbers = #tpu.dot_dimension_numbers<[1], [1], [0], [0], [0, 0, 1, 0], [], []>} : vector<8x128xbf16>, vector<8x128xbf16>, vector<8x8xf32> -> vector<8x8xf32>
    %219 = arith.mulf %207, %215 : vector<8x128xf32>
    %cst_115 = arith.constant dense<0.000000e+00> : vector<8xf32>
    %220 = vector.multi_reduction <add>, %219, %cst_115 [1] : vector<8x128xf32> to vector<8xf32>
    %221 = vector.shape_cast %220 : vector<8xf32> to vector<8x1xf32>
    %cst_116 = arith.constant dense<0xFF800000> : vector<8xf32>
    %222 = vector.multi_reduction <maximumf>, %218, %cst_116 [1] : vector<8x8xf32> to vector<8xf32>
    %223 = vector.shape_cast %222 : vector<8xf32> to vector<8x1xf32>
    %224 = vector.broadcast %223 : vector<8x1xf32> to vector<8x8xf32>
    %225 = arith.subf %218, %224 : vector<8x8xf32>
    %226 = math.exp %225 : vector<8x8xf32>
    %cst_117 = arith.constant dense<0.000000e+00> : vector<8xf32>
    %227 = vector.multi_reduction <add>, %226, %cst_117 [1] : vector<8x8xf32> to vector<8xf32>
    %228 = vector.shape_cast %227 : vector<8xf32> to vector<8x1xf32>
    %229 = math.log %228 : vector<8x1xf32>
    %230 = arith.addf %229, %223 : vector<8x1xf32>
    %231 = arith.subf %230, %221 : vector<8x1xf32>
    %232 = vector.shape_cast %231 : vector<8x1xf32> to vector<1x8x1xf32>
    %cst_118 = arith.constant dense<0.000000e+00> : vector<1xf32>
    %233 = vector.multi_reduction <add>, %232, %cst_118 [1, 2] : vector<1x8x1xf32> to vector<1xf32>
    %234 = vector.shape_cast %233 : vector<1xf32> to vector<1x1x1xf32>
    %235 = vector.extract %234[0, 0, 0] : f32 from vector<1x1x1xf32>
    %cst_119 = arith.constant 8.000000e+00 : f32
    %236 = arith.divf %235, %cst_119 : f32
    %237 = arith.addf %177, %236 : f32
    %238 = arith.mulf %196, %196 : vector<8x128xf32>
    %cst_120 = arith.constant dense<0.000000e+00> : vector<8xf32>
    %239 = vector.multi_reduction <add>, %238, %cst_120 [1] : vector<8x128xf32> to vector<8xf32>
    %240 = vector.shape_cast %239 : vector<8xf32> to vector<8x1xf32>
    %cst_121 = arith.constant 9.99999996E-13 : f32
    %241 = vector.broadcast %cst_121 : f32 to vector<8x1xf32>
    %242 = arith.addf %240, %241 : vector<8x1xf32>
    %243 = math.rsqrt %242 : vector<8x1xf32>
    %244 = vector.broadcast %243 : vector<8x1xf32> to vector<8x128xf32>
    %245 = arith.mulf %196, %244 : vector<8x128xf32>
    %cst_122 = arith.constant 5.000000e+00 : f32
    %246 = vector.broadcast %cst_122 : f32 to vector<8x128xf32>
    %247 = arith.mulf %245, %246 : vector<8x128xf32>
    %248 = arith.mulf %197, %197 : vector<8x128xf32>
    %cst_123 = arith.constant dense<0.000000e+00> : vector<8xf32>
    %249 = vector.multi_reduction <add>, %248, %cst_123 [1] : vector<8x128xf32> to vector<8xf32>
    %250 = vector.shape_cast %249 : vector<8xf32> to vector<8x1xf32>
    %cst_124 = arith.constant 9.99999996E-13 : f32
    %251 = vector.broadcast %cst_124 : f32 to vector<8x1xf32>
    %252 = arith.addf %250, %251 : vector<8x1xf32>
    %253 = math.rsqrt %252 : vector<8x1xf32>
    %254 = vector.broadcast %253 : vector<8x1xf32> to vector<8x128xf32>
    %255 = arith.mulf %197, %254 : vector<8x128xf32>
    %256 = arith.truncf %247 : vector<8x128xf32> to vector<8x128xbf16>
    %257 = arith.truncf %255 : vector<8x128xf32> to vector<8x128xbf16>
    %cst_125 = arith.constant dense<0.000000e+00> : vector<8x8xf32>
    %258 = tpu.matmul %256, %257, %cst_125 {dimension_numbers = #tpu.dot_dimension_numbers<[1], [1], [0], [0], [0, 0, 1, 0], [], []>} : vector<8x128xbf16>, vector<8x128xbf16>, vector<8x8xf32> -> vector<8x8xf32>
    %259 = arith.mulf %247, %255 : vector<8x128xf32>
    %cst_126 = arith.constant dense<0.000000e+00> : vector<8xf32>
    %260 = vector.multi_reduction <add>, %259, %cst_126 [1] : vector<8x128xf32> to vector<8xf32>
    %261 = vector.shape_cast %260 : vector<8xf32> to vector<8x1xf32>
    %cst_127 = arith.constant dense<0xFF800000> : vector<8xf32>
    %262 = vector.multi_reduction <maximumf>, %258, %cst_127 [1] : vector<8x8xf32> to vector<8xf32>
    %263 = vector.shape_cast %262 : vector<8xf32> to vector<8x1xf32>
    %264 = vector.broadcast %263 : vector<8x1xf32> to vector<8x8xf32>
    %265 = arith.subf %258, %264 : vector<8x8xf32>
    %266 = math.exp %265 : vector<8x8xf32>
    %cst_128 = arith.constant dense<0.000000e+00> : vector<8xf32>
    %267 = vector.multi_reduction <add>, %266, %cst_128 [1] : vector<8x8xf32> to vector<8xf32>
    %268 = vector.shape_cast %267 : vector<8xf32> to vector<8x1xf32>
    %269 = math.log %268 : vector<8x1xf32>
    %270 = arith.addf %269, %263 : vector<8x1xf32>
    %271 = arith.subf %270, %261 : vector<8x1xf32>
    %272 = vector.shape_cast %271 : vector<8x1xf32> to vector<1x8x1xf32>
    %cst_129 = arith.constant dense<0.000000e+00> : vector<1xf32>
    %273 = vector.multi_reduction <add>, %272, %cst_129 [1, 2] : vector<1x8x1xf32> to vector<1xf32>
    %274 = vector.shape_cast %273 : vector<1xf32> to vector<1x1x1xf32>
    %275 = vector.extract %274[0, 0, 0] : f32 from vector<1x1x1xf32>
    %cst_130 = arith.constant 8.000000e+00 : f32
    %276 = arith.divf %275, %cst_130 : f32
    %cst_131 = arith.constant 4.000000e+00 : f32
    %277 = arith.divf %237, %cst_131 : f32
    %cst_132 = arith.constant 0.00999999977 : f32
    %278 = arith.mulf %cst_132, %277 : f32
    %279 = arith.addf %276, %278 : f32
    %c0_133 = arith.constant 0 : index
    %c0_134 = arith.constant 0 : index
    %280 = memref.load %arg6[%c0_133, %c0_134] : memref<1x1xf32, #tpu.memory_space<smem>>
    memref.store %279, %arg6[%c0_133, %c0_134] : memref<1x1xf32, #tpu.memory_space<smem>>
    return
  }
}

</mosaic_0001>

<bundles_post_ra>
// kernel: tpu_custom_call.1
= control target key start
LH: loop header
LB: loop body
LE: loop exit
PB: predicated region body
PF: predicated region fallthrough
CT: control target
= control target key end

     0   :  { %11 = vsyncpa [#allocation3], 0  ;;  %s2383_s0 = inlined_call_operand.hbm [shape: bf16[4,8,128], index: 0, kind: input, shape index: {}]   ;;  %s2384_s1 = inlined_call_operand.hbm [shape: bf16[4,128,128], index: 1, kind: input, shape index: {}]   ;;  %s2385_s2 = inlined_call_operand.vmem [shape: f32[4,1,128], index: 2, kind: input, shape index: {}]   ;;  %s2386_s3 = inlined_call_operand.hbm [shape: bf16[4,8,128], index: 3, kind: input, shape index: {}]   ;;  %s2387_s4 = inlined_call_operand.hbm [shape: bf16[4,128,128], index: 4, kind: input, shape index: {}]   ;;  %s2388_s5 = inlined_call_operand.vmem [shape: f32[4,1,128], index: 5, kind: input, shape index: {}]   ;;  %s2389_s6 = inlined_call_operand.hbm [shape: f32[1,1], index: 6, kind: output, shape index: {}]  }
   0x1   :  { %12 = vsyncpa [#allocation6], 0 }
   0x2   :  { %13 = vsyncpa [#allocation9], 0 }
   0x3   :  { %14 = vsyncpa [#allocation4], 0  ;;  %s2028_s21 = smov [#allocation5]   ;;  %s2029_s23 = smov [#allocation2]  }
   0x4   :  { %s32_s22 = sshll.u32 %s2028_s21, 4  ;;  %s20_s24 = sshll.u32 %s2029_s23, 4  ;;  %s33_s22 = int_to_ptr.vmem [resolvable:$true] %s32_s22  ;;  %s2072_s24 = int_to_ptr.vmem [resolvable:$true] %s20_s24 }
   0x5   :  { %s1922_s27 = scalar_lea.hbm %s2384_s1, 4096 }
   0x6   :  { %p1923_p0 = scmp.ne.s32.totalorder %s2384_s1, %s1922_s27  ;;  %p1926_p1 = scmp.lt.u32.totalorder %s1922_s27, %s2384_s1 }
   0x8   :  { %p1928_p2 = pnand %p1926_p1, %p1923_p0 }
   0xa   :  { %1931 = shalt.err (!%p1928_p2)
}
   0xb   :  { %s1932_s8 = scalar_lea.vmem %s33_s22, 4096  ;;  %p1937_p4 = scmp.lt.s32.totalorder %s33_s22, %s33_s22 }
   0xc   :  { %p1933_p3 = scmp.ne.s32.totalorder %s33_s22, %s1932_s8  ;;  %p1938_p5 = scmp.lt.s32.totalorder %s1932_s8, %s1932_s8 }
   0xe   :  { %p1939_p6 = por %p1938_p5, %p1937_p4 }
  0x10   :  { %p1940_p7 = pnand %p1939_p6, %p1933_p3 }
  0x12   :  { %1943 = shalt.err (!%p1940_p7)
}
  0x13   :  { %s2030_s9 = smov 64   ;;  %s2031_s10 = smov 4  }
  0x14   :  { %38 = dma.hbm_to_vmem [thread:$0]  %s2384_s1, 4096, %s33_s22, [#allocation6], %s2030_s9, %s2030_s9, %s2031_s10  }
  0x15   :  { %s1944_s15 = scalar_lea.hbm %s2383_s0, 256 }
  0x16   :  { %p1945_p8 = scmp.ne.s32.totalorder %s2383_s0, %s1944_s15  ;;  %p1948_p9 = scmp.lt.u32.totalorder %s1944_s15, %s2383_s0 }
  0x18   :  { %p1950_p10 = pnand %p1948_p9, %p1945_p8 }
  0x1a   :  { %1953 = shalt.err (!%p1950_p10)
}
  0x1b   :  { %s1954_s20 = scalar_lea.vmem %s2072_s24, 256  ;;  %p1959_p12 = scmp.lt.s32.totalorder %s2072_s24, %s2072_s24 }
  0x1c   :  { %p1955_p11 = scmp.ne.s32.totalorder %s2072_s24, %s1954_s20  ;;  %p1960_p13 = scmp.lt.s32.totalorder %s1954_s20, %s1954_s20 }
  0x1e   :  { %p1961_p0 = por %p1960_p13, %p1959_p12 }
  0x20   :  { %p1962_p1 = pnand %p1961_p0, %p1955_p11 }
  0x22   :  { %1965 = shalt.err (!%p1962_p1)
}
  0x23   :  { %26 = dma.hbm_to_vmem [thread:$0]  %s2383_s0, 256, %s2072_s24, [#allocation3], %s2030_s9, %s2030_s9, %s2031_s10  }
  0x24   :  { %s2032_s22 = smov [#allocation7]   ;;  %s2033_s25 = smov [#allocation8]  }
  0x25   :  { %s46_s23 = sshll.u32 %s2032_s22, 4  ;;  %s58_s26 = sshll.u32 %s2033_s25, 4  ;;  %s47_s23 = int_to_ptr.vmem [resolvable:$true] %s46_s23  ;;  %s2109_s26 = int_to_ptr.vmem [resolvable:$true] %s58_s26 }
  0x26   :  { %s1966_s29 = scalar_lea.hbm %s2386_s3, 256 }
  0x27   :  { %p1967_p2 = scmp.ne.s32.totalorder %s2386_s3, %s1966_s29  ;;  %p1970_p3 = scmp.lt.u32.totalorder %s1966_s29, %s2386_s3 }
  0x29   :  { %p1972_p4 = pnand %p1970_p3, %p1967_p2 }
  0x2b   :  { %1975 = shalt.err (!%p1972_p4)
}
  0x2c   :  { %s1976_s0 = scalar_lea.vmem %s47_s23, 256  ;;  %p1981_p6 = scmp.lt.s32.totalorder %s47_s23, %s47_s23 }
  0x2d   :  { %p1977_p5 = scmp.ne.s32.totalorder %s47_s23, %s1976_s0  ;;  %p1982_p7 = scmp.lt.s32.totalorder %s1976_s0, %s1976_s0 }
  0x2f   :  { %p1983_p8 = por %p1982_p7, %p1981_p6 }
  0x31   :  { %p1984_p9 = pnand %p1983_p8, %p1977_p5 }
  0x33   :  { %1987 = shalt.err (!%p1984_p9)
}
  0x34   :  { %52 = dma.hbm_to_vmem [thread:$0]  %s2386_s3, 256, %s47_s23, [#allocation6], %s2030_s9, %s2030_s9, %s2031_s10  }
  0x35   :  { %s1988_s15 = scalar_lea.hbm %s2387_s4, 4096 }
  0x36   :  { %p1989_p10 = scmp.ne.s32.totalorder %s2387_s4, %s1988_s15  ;;  %p1992_p11 = scmp.lt.u32.totalorder %s1988_s15, %s2387_s4 }
  0x38   :  { %p1994_p12 = pnand %p1992_p11, %p1989_p10 }
  0x3a   :  { %1997 = shalt.err (!%p1994_p12)
}
  0x3b   :  { %s1998_s20 = scalar_lea.vmem %s2109_s26, 4096  ;;  %p2003_p0 = scmp.lt.s32.totalorder %s2109_s26, %s2109_s26 }
  0x3c   :  { %p1999_p13 = scmp.ne.s32.totalorder %s2109_s26, %s1998_s20  ;;  %p2004_p1 = scmp.lt.s32.totalorder %s1998_s20, %s1998_s20 }
  0x3e   :  { %p2005_p2 = por %p2004_p1, %p2003_p0 }
  0x40   :  { %p2006_p3 = pnand %p2005_p2, %p1999_p13 }
  0x42   :  { %2009 = shalt.err (!%p2006_p3)
}
  0x43   :  { %64 = dma.hbm_to_vmem [thread:$0]  %s2387_s4, 4096, %s2109_s26, [#allocation9], %s2030_s9, %s2030_s9, %s2031_s10  }
  0x44   :  { %2020 = dma.done.wait [#allocation3], 256  }
  0x45   :  { %2021 = vsyncadd [#allocation3], 4294967040 }
  0x46   :  { %2022 = dma.done.wait [#allocation6], 4352  }
  0x47   :  { %2023 = vsyncadd [#allocation6], 4294962944 }
  0x48   :  { %2024 = dma.done.wait [#allocation9], 4096  }
  0x49   :  { %2025 = vsyncadd [#allocation9], 4294963200  ;;  %v2034_v0 = vmov 0.0   ;;  %vm2035_vm0 = vmmov 0   ;;  %v1818_v1 = vld [vmem:[#allocation8] sm:$0xff]   ;;  %v1819_v2 = vld [vmem:[#allocation5] sm:$0xff]  }
  0x4a   :  { %1629 = vmatprep.subr.bf16.mxu1 %v2034_v0  ;;  %1609 = vmatprep.subr.bf16.mxu0 %v2034_v0  ;;  %v1820_v3 = vld [vmem:[#allocation8 + $0x8] sm:$0xff]   ;;  %v1821_v4 = vld [vmem:[#allocation5 + $0x8] sm:$0xff]   ;;  %v1822_v5 = vld [vmem:[#allocation8 + $0x10] sm:$0xff]   ;;  %vm362_vm1 = vcmask 64512   ;;  %vm376_vm2 = vcmask 7168   ;;  %s2010_s22 = scalar_lea.hbm %s2389_s6, 16 }
  0x4b   :  { %1645 = vmatprep.mubr.msk.bf16.mxu1 %vm2035_vm0, %v2034_v0  ;;  %1625 = vmatprep.mubr.msk.bf16.mxu0 %vm2035_vm0, %v2034_v0  ;;  %v1823_v6 = vld [vmem:[#allocation5 + $0x10] sm:$0xff]   ;;  %v1824_v7 = vld [vmem:[#allocation8 + $0x18] sm:$0xff]   ;;  %v1825_v8 = vld [vmem:[#allocation5 + $0x18] sm:$0xff]   ;;  %p2011_p4 = scmp.ne.s32.totalorder %s2389_s6, %s2010_s22  ;;  %p2014_p5 = scmp.lt.u32.totalorder %s2010_s22, %s2389_s6 }
  0x4c   :  { %1630 = vmatpush3.bf16.msra.mxu1 %v1818_v1  ;;  %1610 = vmatpush3.bf16.msra.mxu0 %v1819_v2  ;;  %v1826_v9 = vld [vmem:[#allocation8 + $0x20] sm:$0xff]   ;;  %v1827_v10 = vld [vmem:[#allocation5 + $0x20] sm:$0xff]   ;;  %v1828_v11 = vld [vmem:[#allocation8 + $0x28] sm:$0xff]  }
  0x4d   :  { %1631 = vmatprep.subr.bf16.mxu1 %v2034_v0  ;;  %1611 = vmatprep.subr.bf16.mxu0 %v2034_v0  ;;  %v1829_v12 = vld [vmem:[#allocation5 + $0x28] sm:$0xff]   ;;  %v1830_v13 = vld [vmem:[#allocation8 + $0x30] sm:$0xff]   ;;  %v1831_v14 = vld [vmem:[#allocation5 + $0x30] sm:$0xff]   ;;  %p2016_p6 = pnand %p2014_p5, %p2011_p4 }
  0x4e   :  { %v1832_v15 = vld [vmem:[#allocation8 + $0x38] sm:$0xff]   ;;  %v1833_v16 = vld [vmem:[#allocation5 + $0x38] sm:$0xff]   ;;  %v192_v17 = vld [vmem:[#allocation7] sm:$0xf] }
  0x4f   :  { %v1834_v18 = vld [vmem:[#allocation5 + $0x40] sm:$0xff]   ;;  %v80_v19 = vld [vmem:[#allocation2] sm:$0xf]  ;;  %v1835_v20 = vld [vmem:[#allocation5 + $0x48] sm:$0xff]  }
  0x50   :  { %1632 = vmatpush3.bf16.msra.mxu1 %v1820_v3  ;;  %1612 = vmatpush3.bf16.msra.mxu0 %v1821_v4  ;;  %v1836_v21 = vld [vmem:[#allocation5 + $0x50] sm:$0xff]   ;;  %v1837_v22 = vld [vmem:[#allocation5 + $0x58] sm:$0xff]   ;;  %v1838_v23 = vld [vmem:[#allocation5 + $0x60] sm:$0xff]  }
  0x51   :  { %1633 = vmatprep.subr.bf16.mxu1 %v2034_v0  ;;  %1613 = vmatprep.subr.bf16.mxu0 %v2034_v0  ;;  %v1839_v24 = vld [vmem:[#allocation5 + $0x68] sm:$0xff]   ;;  %v1840_v25 = vld [vmem:[#allocation5 + $0x70] sm:$0xff]   ;;  %v1841_v26 = vld [vmem:[#allocation5 + $0x78] sm:$0xff]  }
  0x52   :  { %v392_v27 = vld [vmem:[#allocation2 + $0x4] sm:$0xf]  ;;  %v1458_v28 = vld [vmem:[%s2388_s5] ss:$0 sm:$0xff]  ;;  %v1843_v59 = vld [vmem:[#allocation8 + $0x48] sm:$0xff]  }
  0x53   :  { %v1449_v29 = vld [vmem:[%s2385_s2] ss:$0 sm:$0xff]  ;;  %v1844_v60 = vld [vmem:[#allocation8 + $0x50] sm:$0xff]   ;;  %v1845_v61 = vld [vmem:[#allocation8 + $0x58] sm:$0xff]  }
  0x54   :  { %1634 = vmatpush3.bf16.msra.mxu1 %v1822_v5  ;;  %1614 = vmatpush3.bf16.msra.mxu0 %v1823_v6  ;;  %v1842_v57 = vld [vmem:[#allocation8 + $0x40] sm:$0xff]   ;;  %v1847_v63 = vld [vmem:[#allocation8 + $0x68] sm:$0xff]   ;;  %v1848_v1 = vld [vmem:[#allocation8 + $0x70] sm:$0xff]  }
  0x55   :  { %1635 = vmatprep.subr.bf16.mxu1 %v2034_v0  ;;  %1615 = vmatprep.subr.bf16.mxu0 %v2034_v0  ;;  %v1846_v62 = vld [vmem:[#allocation8 + $0x60] sm:$0xff]   ;;  %v1849_v2 = vld [vmem:[#allocation8 + $0x78] sm:$0xff]   ;;  %v507_v3 = vld [vmem:[#allocation7 + $0x4] sm:$0xf] }
  0x56   :  { %v1850_v4 = vld [vmem:[#allocation5 + $0x80] sm:$0xff]   ;;  %v1851_v5 = vld [vmem:[#allocation5 + $0x88] sm:$0xff]   ;;  %v1852_v6 = vld [vmem:[#allocation5 + $0x90] sm:$0xff]  }
  0x58   :  { %1636 = vmatpush3.bf16.msra.mxu1 %v1824_v7  ;;  %1616 = vmatpush3.bf16.msra.mxu0 %v1825_v8  ;;  %v1853_v7 = vld [vmem:[#allocation5 + $0x98] sm:$0xff]   ;;  %v1854_v8 = vld [vmem:[#allocation5 + $0xa0] sm:$0xff]  }
  0x59   :  { %1637 = vmatprep.subr.bf16.mxu1 %v2034_v0  ;;  %1617 = vmatprep.subr.bf16.mxu0 %v2034_v0 }
  0x5c   :  { %1638 = vmatpush3.bf16.msra.mxu1 %v1826_v9  ;;  %1618 = vmatpush3.bf16.msra.mxu0 %v1827_v10  ;;  %v1855_v9 = vld [vmem:[#allocation5 + $0xa8] sm:$0xff]   ;;  %v1856_v10 = vld [vmem:[#allocation5 + $0xb0] sm:$0xff]  }
  0x5d   :  { %1639 = vmatprep.subr.bf16.mxu1 %v2034_v0  ;;  %1619 = vmatprep.subr.bf16.mxu0 %v2034_v0 }
  0x60   :  { %1640 = vmatpush3.bf16.msra.mxu1 %v1828_v11  ;;  %1620 = vmatpush3.bf16.msra.mxu0 %v1829_v12  ;;  %v1857_v11 = vld [vmem:[#allocation5 + $0xb8] sm:$0xff]  }
  0x61   :  { %1641 = vmatprep.subr.bf16.mxu1 %v2034_v0  ;;  %1621 = vmatprep.subr.bf16.mxu0 %v2034_v0  ;;  %v709_v12 = vld [vmem:[#allocation2 + $0x8] sm:$0xf] }
  0x64   :  { %1642 = vmatpush3.bf16.msra.mxu1 %v1830_v13  ;;  %1622 = vmatpush3.bf16.msra.mxu0 %v1831_v14 }
  0x65   :  { %1643 = vmatprep.subr.bf16.mxu1 %v2034_v0  ;;  %1623 = vmatprep.subr.bf16.mxu0 %v2034_v0 }
  0x68   :  { %1644 = vmatpush3.bf16.msra.mxu1 %v1832_v15  ;;  %1624 = vmatpush3.bf16.msra.mxu0 %v1833_v16 }
  0x69   :  { %1655 = vmatprep.subr.bf16.mxu1 %v2034_v0  ;;  %1649 = vmatprep.subr.bf16.mxu0 %v2034_v0 }
  0x6b   :  { %1646 = vmatmul.mubr.bf16.vlgmr.msra.gmra.mrb[0].mxu1 %v192_v17  ;;  %1626 = vmatmul.mubr.bf16.vlgmr.msra.gmra.mrb[0].mxu0 %v80_v19  ;;  %v1478_v17 = vld [vmem:[%s2388_s5 + $0x1] ss:$0 sm:$0xff] }
  0x6c   :  { %1656 = vmatpush3.bf16.msra.mxu1 %v1834_v18  ;;  %1671 = vmatprep.mubr.msk.bf16.mxu1 %vm2035_vm0, %v2034_v0  ;;  %v1468_v18 = vld [vmem:[%s2385_s2 + $0x1] ss:$0 sm:$0xff] }
  0x6d   :  { %1657 = vmatprep.subr.bf16.mxu1 %v2034_v0  ;;  %1651 = vmatprep.mubr.msk.bf16.mxu0 %vm2035_vm0, %v2034_v0 }
  0x70   :  { %1658 = vmatpush3.bf16.msra.mxu1 %v1835_v20 }
  0x71   :  { %1659 = vmatprep.subr.bf16.mxu1 %v2034_v0 }
  0x74   :  { %1660 = vmatpush3.bf16.msra.mxu1 %v1836_v21 }
  0x75   :  { %1661 = vmatprep.subr.bf16.mxu1 %v2034_v0 }
  0x78   :  { %1662 = vmatpush3.bf16.msra.mxu1 %v1837_v22 }
  0x79   :  { %1663 = vmatprep.subr.bf16.mxu1 %v2034_v0 }
  0x7c   :  { %1664 = vmatpush3.bf16.msra.mxu1 %v1838_v23 }
  0x7d   :  { %1665 = vmatprep.subr.bf16.mxu1 %v2034_v0 }
  0x80   :  { %1666 = vmatpush3.bf16.msra.mxu1 %v1839_v24 }
  0x81   :  { %1667 = vmatprep.subr.bf16.mxu1 %v2034_v0 }
  0x84   :  { %1668 = vmatpush3.bf16.msra.mxu1 %v1840_v25 }
  0x85   :  { %1669 = vmatprep.subr.bf16.mxu1 %v2034_v0 }
  0x88   :  { %1670 = vmatpush3.bf16.msra.mxu1 %v1841_v26 }
  0x89   :  { %1695 = vmatprep.subr.bf16.mxu1 %v2034_v0 }
  0x8b   :  { %1672 = vmatmul.mubr.bf16.vlgmr.msra.gmra.mrb[4].mxu1 %v392_v27 }
  0x8c   :  { %1697 = vmatprep.mubr.msk.bf16.mxu1 %vm2035_vm0, %v2034_v0 }
 0x13e   :  { %v298_v30 = vpop.f32.mrb[0].mxu1  ;;  %v186_v33 = vpop.f32.mrb[0].mxu0 }
 0x13f   :  { %v2188_v31 = vadd.f32 %v1458_v28, %v298_v30  ;;  %v1647_v32 = vpop.f32.mrb[1].mxu1  ;;  %v2190_v35 = vadd.f32 %v1449_v29, %v186_v33  ;;  %v1627_v36 = vpop.f32.mrb[1].mxu0 }
 0x140   :  { %v301_v34 = vpop.f32.mrb[2].mxu1  ;;  %v189_v39 = vpop.f32.mrb[2].mxu0  ;;  %v1488_v32 = vld [vmem:[%s2385_s2 + $0x2] ss:$0 sm:$0xff] }
 0x141   :  { %v1648_v37 = vpop.f32.mrb[3].mxu1  ;;  %v311_v38 = vmul.f32 %v2188_v31, %v2188_v31  ;;  %v1628_v40 = vpop.f32.mrb[3].mxu0  ;;  %v304_v41 = vmul.f32 %v2190_v35, %v2190_v35 }
 0x143   :  { %312 = vadd.xlane.f32.xlu0 %v311_v38 }
 0x147   :  { %305 = vadd.xlane.f32.xlu0 %v304_v41 }
 0x15e   :  { %v2196_v42 = vpop.f32.mrb[4].mxu1 }
 0x15f   :  { %v1673_v43 = vpop.f32.mrb[5].mxu1  ;;  %v2236_v23 = vadd.f32 %v1468_v18, %v2196_v42 }
 0x160   :  { %v503_v44 = vpop.f32.mrb[6].mxu1 }
 0x161   :  { %v1674_v45 = vpop.f32.mrb[7].mxu1  ;;  %v623_v26 = vmul.f32 %v2236_v23, %v2236_v23 }
 0x1d0   :  { %v313_v46 = vpop.xlane.xlu0 %312 }
 0x1d1   :  { %v314_v47 = vadd.f32 1e-12, %v313_v46 }
 0x1d3   :  { %1882 = vrsqrt.f32 %v314_v47  ;;  %v1858_v47 = vld [vmem:[#allocation8 + $0x80] sm:$0xff]  }
 0x1d4   :  { %v306_v48 = vpop.xlane.xlu0 %305 }
 0x1d5   :  { %v307_v49 = vadd.f32 1e-12, %v306_v48 }
 0x1d7   :  { %1884 = vrsqrt.f32 %v307_v49  ;;  %v1859_v49 = vld [vmem:[#allocation8 + $0x88] sm:$0xff]  }
 0x1dd   :  { %v1883_v50 = vpop.eup %1882 }
 0x1de   :  { %v316_v51 = vmul.f32 %v1883_v50, %v2188_v31  ;;  %v1860_v50 = vld [vmem:[#allocation8 + $0x90] sm:$0xff]  }
 0x1e0   :  { %v318_v52 = vpack.c.bf16 %v316_v51, %v316_v51 }
 0x1e1   :  { %v1885_v53 = vpop.eup %1884 }
 0x1e2   :  { %1650 = vmatpush3.bf16.xpose.msra.mxu0 %v318_v52  ;;  %v309_v54 = vmul.f32 %v1885_v53, %v2190_v35  ;;  %v1862_v52 = vld [vmem:[#allocation8 + $0xa0] sm:$0xff]   ;;  %v1863_v53 = vld [vmem:[#allocation8 + $0xa8] sm:$0xff]  }
 0x1e3   :  { %1675 = vmatprep.subr.bf16.mxu0 %v2034_v0 }
 0x1e4   :  { %v310_v55 = vmul.f32 5.0, %v309_v54  ;;  %v1864_v54 = vld [vmem:[#allocation8 + $0xb0] sm:$0xff]  }
 0x1e6   :  { %v317_v56 = vpack.c.bf16 %v310_v55, %v310_v55  ;;  %v2201_v58 = vmul.f32 %v316_v51, %v310_v55  ;;  %v1861_v51 = vld [vmem:[#allocation8 + $0x98] sm:$0xff]  }
 0x1e7   :  { %v1865_v55 = vld [vmem:[#allocation8 + $0xb8] sm:$0xff]  }
 0x1e9   :  { %1652 = vmatmul.mubr.bf16.vlgmr.msra.gmra.mrb[4].mxu0 %v317_v56  ;;  %v824_v56 = vld [vmem:[#allocation7 + $0x8] sm:$0xf] }
 0x1ea   :  { %1676 = vmatpush3.bf16.msra.mxu0 %v1842_v57  ;;  %1691 = vmatprep.mubr.msk.bf16.mxu0 %vm2035_vm0, %v2034_v0  ;;  %v1866_v57 = vld [vmem:[#allocation5 + $0xc0] sm:$0xff]  }
 0x1eb   :  { %1677 = vmatprep.subr.bf16.mxu0 %v2034_v0 }
 0x1ee   :  { %1678 = vmatpush3.bf16.msra.mxu0 %v1843_v59  ;;  %v1867_v59 = vld [vmem:[#allocation5 + $0xc8] sm:$0xff]  }
 0x1ef   :  { %1679 = vmatprep.subr.bf16.mxu0 %v2034_v0 }
 0x1f2   :  { %1680 = vmatpush3.bf16.msra.mxu0 %v1844_v60  ;;  %v1868_v60 = vld [vmem:[#allocation5 + $0xd0] sm:$0xff]  }
 0x1f3   :  { %1681 = vmatprep.subr.bf16.mxu0 %v2034_v0 }
 0x1f6   :  { %1682 = vmatpush3.bf16.msra.mxu0 %v1845_v61  ;;  %v1869_v61 = vld [vmem:[#allocation5 + $0xd8] sm:$0xff]  }
 0x1f7   :  { %1683 = vmatprep.subr.bf16.mxu0 %v2034_v0 }
 0x1fa   :  { %1684 = vmatpush3.bf16.msra.mxu0 %v1846_v62  ;;  %v1870_v62 = vld [vmem:[#allocation5 + $0xe0] sm:$0xff]  }
 0x1fb   :  { %1685 = vmatprep.subr.bf16.mxu0 %v2034_v0 }
 0x1fe   :  { %1686 = vmatpush3.bf16.msra.mxu0 %v1847_v63  ;;  %v1871_v63 = vld [vmem:[#allocation5 + $0xe8] sm:$0xff]  }
 0x1ff   :  { %1687 = vmatprep.subr.bf16.mxu0 %v2034_v0 }
 0x202   :  { %1688 = vmatpush3.bf16.msra.mxu0 %v1848_v1  ;;  %v1872_v1 = vld [vmem:[#allocation5 + $0xf0] sm:$0xff]  }
 0x203   :  { %1689 = vmatprep.subr.bf16.mxu0 %v2034_v0 }
 0x206   :  { %1690 = vmatpush3.bf16.msra.mxu0 %v1849_v2  ;;  %v1873_v2 = vld [vmem:[#allocation5 + $0xf8] sm:$0xff]  }
 0x207   :  { %1701 = vmatprep.subr.bf16.mxu0 %v2034_v0 }
 0x209   :  { %1692 = vmatmul.mubr.bf16.vlgmr.msra.gmra.mrb[8].mxu0 %v507_v3  ;;  %v1026_v3 = vld [vmem:[#allocation2 + $0xc] sm:$0xf] }
 0x20a   :  { %1702 = vmatpush3.bf16.msra.mxu0 %v1850_v4  ;;  %1717 = vmatprep.mubr.msk.bf16.mxu0 %vm2035_vm0, %v2034_v0 }
 0x20b   :  { %1703 = vmatprep.subr.bf16.mxu0 %v2034_v0 }
 0x20e   :  { %1704 = vmatpush3.bf16.msra.mxu0 %v1851_v5 }
 0x20f   :  { %1705 = vmatprep.subr.bf16.mxu0 %v2034_v0 }
 0x212   :  { %1706 = vmatpush3.bf16.msra.mxu0 %v1852_v6 }
 0x213   :  { %1707 = vmatprep.subr.bf16.mxu0 %v2034_v0 }
 0x216   :  { %1708 = vmatpush3.bf16.msra.mxu0 %v1853_v7 }
 0x217   :  { %1709 = vmatprep.subr.bf16.mxu0 %v2034_v0 }
 0x21a   :  { %1710 = vmatpush3.bf16.msra.mxu0 %v1854_v8  ;;  %v1498_v8 = vld [vmem:[%s2388_s5 + $0x2] ss:$0 sm:$0xff] }
 0x21b   :  { %1711 = vmatprep.subr.bf16.mxu0 %v2034_v0 }
 0x21e   :  { %1712 = vmatpush3.bf16.msra.mxu0 %v1855_v9 }
 0x21f   :  { %1713 = vmatprep.subr.bf16.mxu0 %v2034_v0 }
 0x222   :  { %1714 = vmatpush3.bf16.msra.mxu0 %v1856_v10 }
 0x223   :  { %1715 = vmatprep.subr.bf16.mxu0 %v2034_v0 }
 0x226   :  { %1716 = vmatpush3.bf16.msra.mxu0 %v1857_v11 }
 0x227   :  { %1741 = vmatprep.subr.bf16.mxu0 %v2034_v0 }
 0x229   :  { %1718 = vmatmul.mubr.bf16.vlgmr.msra.gmra.mrb[12].mxu0 %v709_v12 }
 0x22a   :  { %1743 = vmatprep.mubr.msk.bf16.mxu0 %vm2035_vm0, %v2034_v0 }
 0x2bc   :  { %v2225_v13 = vpop.f32.mrb[4].mxu0 }
 0x2bd   :  { %v1653_v14 = vpop.f32.mrb[5].mxu0 }
 0x2be   :  { %v356_v15 = vpop.f32.mrb[6].mxu0 }
 0x2bf   :  { %v1654_v16 = vpop.f32.mrb[7].mxu0 }
 0x2c0   :  { %v1508_v16 = vld [vmem:[%s2385_s2 + $0x3] ss:$0 sm:$0xff] }
 0x2dc   :  { %v615_v19 = vpop.f32.mrb[8].mxu0 }
 0x2dd   :  { %v2233_v20 = vadd.f32 %v1478_v17, %v615_v19  ;;  %v1693_v21 = vpop.f32.mrb[9].mxu0  ;;  %v621_v17 = vadd.f32 %v2236_v23, %v2190_v35 }
 0x2de   :  { %v618_v22 = vpop.f32.mrb[10].mxu0 }
 0x2df   :  { %v1694_v24 = vpop.f32.mrb[11].mxu0  ;;  %v630_v25 = vmul.f32 %v2233_v20, %v2233_v20 }
 0x2e1   :  { %631 = vadd.xlane.f32.xlu1 %v630_v25 }
 0x2e5   :  { %624 = vadd.xlane.f32.xlu1 %v623_v26 }
 0x2fc   :  { %v817_v27 = vpop.f32.mrb[12].mxu0 }
 0x2fd   :  { %v1719_v28 = vpop.f32.mrb[13].mxu0  ;;  %v2245_v33 = vadd.f32 %v1488_v32, %v817_v27 }
 0x2fe   :  { %v820_v29 = vpop.f32.mrb[14].mxu0 }
 0x2ff   :  { %v1720_v30 = vpop.f32.mrb[15].mxu0  ;;  %v940_v34 = vmul.f32 %v2245_v33, %v2245_v33  ;;  %v938_v19 = vadd.f32 %v2245_v33, %v621_v17 }
 0x301   :  { %941 = vadd.xlane.f32.xlu1 %v940_v34 }
 0x36e   :  { %v632_v36 = vpop.xlane.xlu1 %631 }
 0x36f   :  { %v633_v37 = vadd.f32 1e-12, %v632_v36 }
 0x371   :  { %1886 = vrsqrt.f32 %v633_v37 }
 0x372   :  { %v625_v38 = vpop.xlane.xlu1 %624 }
 0x373   :  { %v626_v39 = vadd.f32 1e-12, %v625_v38 }
 0x375   :  { %1888 = vrsqrt.f32 %v626_v39 }
 0x37b   :  { %v1887_v40 = vpop.eup %1886 }
 0x37c   :  { %v635_v41 = vmul.f32 %v1887_v40, %v2233_v20 }
 0x37e   :  { %v637_v42 = vpack.c.bf16 %v635_v41, %v635_v41 }
 0x37f   :  { %v1889_v43 = vpop.eup %1888 }
 0x380   :  { %1696 = vmatpush3.bf16.xpose.msra.mxu1 %v637_v42  ;;  %v628_v44 = vmul.f32 %v1889_v43, %v2236_v23  ;;  %v1875_v43 = vld [vmem:[#allocation8 + $0xc8] sm:$0xff]  }
 0x381   :  { %1721 = vmatprep.subr.bf16.mxu1 %v2034_v0 }
 0x382   :  { %v629_v45 = vmul.f32 5.0, %v628_v44  ;;  %v1877_v44 = vld [vmem:[#allocation8 + $0xd8] sm:$0xff]  }
 0x384   :  { %v636_v46 = vpack.c.bf16 %v629_v45, %v629_v45  ;;  %v2252_v48 = vmul.f32 %v635_v41, %v629_v45  ;;  %v1874_v41 = vld [vmem:[#allocation8 + $0xc0] sm:$0xff]  }
 0x385   :  { %v1878_v45 = vld [vmem:[#allocation8 + $0xe0] sm:$0xff]  }
 0x387   :  { %1698 = vmatmul.mubr.bf16.vlgmr.msra.gmra.mrb[8].mxu1 %v636_v46  ;;  %v1879_v46 = vld [vmem:[#allocation8 + $0xe8] sm:$0xff]  }
 0x388   :  { %1722 = vmatpush3.bf16.msra.mxu1 %v1858_v47  ;;  %1737 = vmatprep.mubr.msk.bf16.mxu1 %vm2035_vm0, %v2034_v0  ;;  %v1880_v47 = vld [vmem:[#allocation8 + $0xf0] sm:$0xff]  }
 0x389   :  { %1723 = vmatprep.subr.bf16.mxu1 %v2034_v0 }
 0x38c   :  { %1724 = vmatpush3.bf16.msra.mxu1 %v1859_v49  ;;  %v1881_v49 = vld [vmem:[#allocation8 + $0xf8] sm:$0xff]  }
 0x38d   :  { %1725 = vmatprep.subr.bf16.mxu1 %v2034_v0 }
 0x38e   :  { %v942_v23 = vpop.xlane.xlu1 %941 }
 0x38f   :  { %v943_v29 = vadd.f32 1e-12, %v942_v23 }
 0x390   :  { %1726 = vmatpush3.bf16.msra.mxu1 %v1860_v50  ;;  %v1141_v50 = vld [vmem:[#allocation7 + $0xc] sm:$0xf] }
 0x391   :  { %1727 = vmatprep.subr.bf16.mxu1 %v2034_v0  ;;  %1890 = vrsqrt.f32 %v943_v29 }
 0x394   :  { %1728 = vmatpush3.bf16.msra.mxu1 %v1861_v51 }
 0x395   :  { %1729 = vmatprep.subr.bf16.mxu1 %v2034_v0 }
 0x398   :  { %1730 = vmatpush3.bf16.msra.mxu1 %v1862_v52 }
 0x399   :  { %1731 = vmatprep.subr.bf16.mxu1 %v2034_v0 }
 0x39b   :  { %v1891_v34 = vpop.eup %1890 }
 0x39c   :  { %1732 = vmatpush3.bf16.msra.mxu1 %v1863_v53  ;;  %v945_v38 = vmul.f32 %v1891_v34, %v2245_v33  ;;  %v1876_v33 = vld [vmem:[#allocation8 + $0xd0] sm:$0xff]  }
 0x39d   :  { %1733 = vmatprep.subr.bf16.mxu1 %v2034_v0 }
 0x39e   :  { %v2308_v40 = vmul.f32 5.0, %v945_v38 }
 0x3a0   :  { %1734 = vmatpush3.bf16.msra.mxu1 %v1864_v54  ;;  %v953_v42 = vpack.c.bf16 %v2308_v40, %v2308_v40 }
 0x3a1   :  { %1735 = vmatprep.subr.bf16.mxu1 %v2034_v0 }
 0x3a4   :  { %1736 = vmatpush3.bf16.msra.mxu1 %v1865_v55  ;;  %v1518_v55 = vld [vmem:[%s2388_s5 + $0x3] ss:$0 sm:$0xff] }
 0x3a5   :  { %1747 = vmatprep.subr.bf16.mxu1 %v2034_v0 }
 0x3a7   :  { %1738 = vmatmul.mubr.bf16.vlgmr.msra.gmra.mrb[12].mxu1 %v824_v56  ;;  %v622_v56 = vadd.f32 %v2233_v20, %v2188_v31 }
 0x3a8   :  { %1748 = vmatpush3.bf16.msra.mxu1 %v1866_v57  ;;  %1763 = vmatprep.mubr.msk.bf16.mxu1 %vm2035_vm0, %v2034_v0 }
 0x3a9   :  { %1749 = vmatprep.subr.bf16.mxu1 %v2034_v0 }
 0x3ac   :  { %1750 = vmatpush3.bf16.msra.mxu1 %v1867_v59 }
 0x3ad   :  { %1751 = vmatprep.subr.bf16.mxu1 %v2034_v0 }
 0x3b0   :  { %1752 = vmatpush3.bf16.msra.mxu1 %v1868_v60 }
 0x3b1   :  { %1753 = vmatprep.subr.bf16.mxu1 %v2034_v0 }
 0x3b4   :  { %1754 = vmatpush3.bf16.msra.mxu1 %v1869_v61 }
 0x3b5   :  { %1755 = vmatprep.subr.bf16.mxu1 %v2034_v0 }
 0x3b8   :  { %1756 = vmatpush3.bf16.msra.mxu1 %v1870_v62 }
 0x3b9   :  { %1757 = vmatprep.subr.bf16.mxu1 %v2034_v0 }
 0x3bc   :  { %1758 = vmatpush3.bf16.msra.mxu1 %v1871_v63 }
 0x3bd   :  { %1759 = vmatprep.subr.bf16.mxu1 %v2034_v0 }
 0x3c0   :  { %1760 = vmatpush3.bf16.msra.mxu1 %v1872_v1 }
 0x3c1   :  { %1761 = vmatprep.subr.bf16.mxu1 %v2034_v0 }
 0x3c4   :  { %1762 = vmatpush3.bf16.msra.mxu1 %v1873_v2 }
 0x3c5   :  { %1787 = vmatprep.subr.bf16.mxu1 %v2034_v0 }
 0x3c7   :  { %1764 = vmatmul.mubr.bf16.vlgmr.msra.gmra.mrb[16].mxu1 %v1026_v3  ;;  %v363_v3 = vsel %vm362_vm1, %v2225_v13, -inf }
 0x3c8   :  { %1789 = vmatprep.mubr.msk.bf16.mxu1 %vm2035_vm0, %v2034_v0 }
 0x45a   :  { %v2276_v4 = vpop.f32.mrb[8].mxu1 }
 0x45b   :  { %v1699_v5 = vpop.f32.mrb[9].mxu1  ;;  %v681_v35 = vsel %vm362_vm1, %v2276_v4, -inf }
 0x45c   :  { %v675_v6 = vpop.f32.mrb[10].mxu1 }
 0x45d   :  { %v1700_v7 = vpop.f32.mrb[11].mxu1 }
 0x47a   :  { %v932_v9 = vpop.f32.mrb[12].mxu1 }
 0x47b   :  { %v2281_v10 = vadd.f32 %v1498_v8, %v932_v9  ;;  %v1739_v11 = vpop.f32.mrb[13].mxu1 }
 0x47c   :  { %v935_v12 = vpop.f32.mrb[14].mxu1 }
 0x47d   :  { %v1740_v14 = vpop.f32.mrb[15].mxu1  ;;  %v947_v15 = vmul.f32 %v2281_v10, %v2281_v10  ;;  %v939_v59 = vadd.f32 %v2281_v10, %v622_v56 }
 0x47f   :  { %948 = vadd.xlane.f32.xlu0 %v947_v15 }
 0x49a   :  { %v1134_v18 = vpop.f32.mrb[16].mxu1 }
 0x49b   :  { %v2291_v21 = vadd.f32 %v1508_v16, %v1134_v18  ;;  %v1765_v22 = vpop.f32.mrb[17].mxu1 }
 0x49c   :  { %v1137_v24 = vpop.f32.mrb[18].mxu1 }
 0x49d   :  { %v1257_v25 = vmul.f32 %v2291_v21, %v2291_v21  ;;  %v2296_v26 = vadd.f32 %v2291_v21, %v938_v19  ;;  %v1766_v27 = vpop.f32.mrb[19].mxu1 }
 0x49f   :  { %1258 = vadd.xlane.f32.xlu1 %v1257_v25  ;;  %v1342_v28 = vmul.f32 %v2296_v26, %v2296_v26 }
 0x4a3   :  { %1343 = vadd.xlane.f32.xlu1 %v1342_v28 }
 0x4a7   :  { %682 = vmax.xlane.f32.xlu1 %v681_v35 }
 0x50c   :  { %v949_v30 = vpop.xlane.xlu0 %948 }
 0x50d   :  { %v950_v32 = vadd.f32 1e-12, %v949_v30 }
 0x50f   :  { %1892 = vrsqrt.f32 %v950_v32 }
 0x519   :  { %v1893_v36 = vpop.eup %1892 }
 0x51a   :  { %v2303_v37 = vmul.f32 %v1893_v36, %v2281_v10 }
 0x51c   :  { %v954_v39 = vpack.c.bf16 %v2303_v37, %v2303_v37 }
 0x51e   :  { %1742 = vmatpush3.bf16.xpose.msra.mxu0 %v954_v39 }
 0x51f   :  { %1767 = vmatprep.subr.bf16.mxu0 %v2034_v0 }
 0x525   :  { %1744 = vmatmul.mubr.bf16.vlgmr.msra.gmra.mrb[16].mxu0 %v953_v42 }
 0x526   :  { %1768 = vmatpush3.bf16.msra.mxu0 %v1874_v41  ;;  %1783 = vmatprep.mubr.msk.bf16.mxu0 %vm2035_vm0, %v2034_v0 }
 0x527   :  { %1769 = vmatprep.subr.bf16.mxu0 %v2034_v0 }
 0x52a   :  { %1770 = vmatpush3.bf16.msra.mxu0 %v1875_v43 }
 0x52b   :  { %1771 = vmatprep.subr.bf16.mxu0 %v2034_v0 }
 0x52c   :  { %v1259_v31 = vpop.xlane.xlu1 %1258 }
 0x52d   :  { %v1260_v20 = vadd.f32 1e-12, %v1259_v31 }
 0x52e   :  { %1772 = vmatpush3.bf16.msra.mxu0 %v1876_v33 }
 0x52f   :  { %1773 = vmatprep.subr.bf16.mxu0 %v2034_v0  ;;  %1894 = vrsqrt.f32 %v1260_v20 }
 0x530   :  { %v1344_v6 = vpop.xlane.xlu1 %1343 }
 0x531   :  { %v1345_v9 = vadd.f32 1e-12, %v1344_v6 }
 0x532   :  { %1774 = vmatpush3.bf16.msra.mxu0 %v1877_v44 }
 0x533   :  { %1775 = vmatprep.subr.bf16.mxu0 %v2034_v0 }
 0x536   :  { %1776 = vmatpush3.bf16.msra.mxu0 %v1878_v45 }
 0x537   :  { %1777 = vmatprep.subr.bf16.mxu0 %v2034_v0 }
 0x539   :  { %v1895_v12 = vpop.eup %1894 }
 0x53a   :  { %1778 = vmatpush3.bf16.msra.mxu0 %v1879_v46  ;;  %v1262_v16 = vmul.f32 %v1895_v12, %v2291_v21  ;;  %v2342_v21 = vpop.xlane.xlu1 %682 }
 0x53b   :  { %1779 = vmatprep.subr.bf16.mxu0 %v2034_v0  ;;  %v684_v34 = vsub.f32 %v2276_v4, %v2342_v21 }
 0x53c   :  { %v1263_v24 = vmul.f32 5.0, %v1262_v16 }
 0x53d   :  { %v685_v38 = vmul.f32 1.442695, %v684_v34 }
 0x53e   :  { %1780 = vmatpush3.bf16.msra.mxu0 %v1880_v47  ;;  %v1270_v28 = vpack.c.bf16 %v1263_v24, %v1263_v24 }
 0x53f   :  { %1781 = vmatprep.subr.bf16.mxu0 %v2034_v0 }
 0x542   :  { %1782 = vmatpush3.bf16.msra.mxu0 %v1881_v49 }
 0x543   :  { %1793 = vmatprep.subr.bf16.mxu0 %v2034_v0 }
 0x545   :  { %1784 = vmatmul.mubr.bf16.vlgmr.msra.gmra.mrb[20].mxu0 %v1141_v50 }
 0x546   :  { %1795 = vmatprep.mubr.msk.bf16.mxu0 %vm2035_vm0, %v2034_v0 }
 0x5f8   :  { %v989_v51 = vpop.f32.mrb[16].mxu0 }
 0x5f9   :  { %v1745_v52 = vpop.f32.mrb[17].mxu0  ;;  %v998_v5 = vsel %vm362_vm1, %v989_v51, -inf }
 0x5fa   :  { %v992_v53 = vpop.f32.mrb[18].mxu0 }
 0x5fb   :  { %v1746_v54 = vpop.f32.mrb[19].mxu0 }
 0x618   :  { %v1249_v57 = vpop.f32.mrb[20].mxu0 }
 0x619   :  { %v1250_v60 = vadd.f32 %v1518_v55, %v1249_v57  ;;  %v1785_v61 = vpop.f32.mrb[21].mxu0 }
 0x61a   :  { %v1252_v62 = vpop.f32.mrb[22].mxu0 }
 0x61b   :  { %v1786_v63 = vpop.f32.mrb[23].mxu0  ;;  %v1264_v1 = vmul.f32 %v1250_v60, %v1250_v60  ;;  %v1256_v0 = vadd.f32 %v1250_v60, %v939_v59 }
 0x61d   :  { %1265 = vadd.xlane.f32.xlu0 %v1264_v1  ;;  %v1349_v2 = vmul.f32 %v1256_v0, %v1256_v0 }
 0x621   :  { %1350 = vadd.xlane.f32.xlu0 %v1349_v2  ;;  %v995_v2 = vmul.f32 %v2303_v37, %v2308_v40 }
 0x625   :  { %364 = vmax.xlane.f32.xlu0 %v363_v3 }
 0x629   :  { %999 = vmax.xlane.f32.xlu0 %v998_v5 }
 0x6aa   :  { %v1266_v7 = vpop.xlane.xlu0 %1265 }
 0x6ab   :  { %v1267_v8 = vadd.f32 1e-12, %v1266_v7 }
 0x6ad   :  { %1896 = vrsqrt.f32 %v1267_v8 }
 0x6ae   :  { %v1351_v10 = vpop.xlane.xlu0 %1350  ;;  %1898 = vrsqrt.f32 %v1345_v9 }
 0x6af   :  { %v1352_v11 = vadd.f32 1e-12, %v1351_v10 }
 0x6b1   :  { %1900 = vrsqrt.f32 %v1352_v11 }
 0x6b2   :  { %v2340_v29 = vpop.xlane.xlu0 %364 }
 0x6b3   :  { %v366_v30 = vsub.f32 %v2225_v13, %v2340_v29 }
 0x6b6   :  { %v2346_v32 = vpop.xlane.xlu0 %999 }
 0x6b7   :  { %v1897_v14 = vpop.eup %1896  ;;  %v1001_v36 = vsub.f32 %v989_v51, %v2346_v32 }
 0x6b8   :  { %v2334_v15 = vmul.f32 %v1897_v14, %v1250_v60  ;;  %v1899_v17 = vpop.eup %1898 }
 0x6b9   :  { %v1347_v25 = vmul.f32 %v1899_v17, %v2296_v26  ;;  %v367_v26 = vmul.f32 1.442695, %v366_v30  ;;  %v1002_v39 = vmul.f32 1.442695, %v1001_v36 }
 0x6ba   :  { %v1271_v18 = vpack.c.bf16 %v2334_v15, %v2334_v15  ;;  %v1312_v5 = vmul.f32 %v2334_v15, %v1263_v24 }
 0x6bb   :  { %v1901_v19 = vpop.eup %1900  ;;  %v1348_v35 = vmul.f32 5.0, %v1347_v25  ;;  %1902 = vpow2.f32 %v367_v26 }
 0x6bc   :  { %1788 = vmatpush3.bf16.xpose.msra.mxu1 %v1271_v18  ;;  %v1354_v22 = vmul.f32 %v1901_v19, %v1256_v0  ;;  %1904 = vpow2.f32 %v685_v38 }
 0x6bd   :  { %v1355_v23 = vpack.c.bf16 %v1348_v35, %v1348_v35  ;;  %1906 = vpow2.f32 %v1002_v39 }
 0x6be   :  { %v1356_v27 = vpack.c.bf16 %v1354_v22, %v1354_v22  ;;  %v1397_v3 = vmul.f32 %v1354_v22, %v1348_v35 }
 0x6c0   :  { %1794 = vmatpush3.bf16.xpose.msra.mxu0 %v1356_v27 }
 0x6c3   :  { %1790 = vmatmul.mubr.bf16.vlgmr.msra.gmra.mrb[20].mxu1 %v1270_v28 }
 0x6c5   :  { %v1903_v33 = vpop.eup %1902 }
 0x6c6   :  { %v1905_v46 = vpop.eup %1904  ;;  %v369_v4 = vsel %vm362_vm1, %v1903_v33, 0.0 }
 0x6c7   :  { %1796 = vmatmul.mubr.bf16.vlgmr.msra.gmra.mrb[24].mxu0 %v1355_v23  ;;  %v1907_v50 = vpop.eup %1906  ;;  %v687_v54 = vsel %vm362_vm1, %v1905_v46, 0.0 }
 0x6c8   :  { %v1004_v53 = vsel %vm362_vm1, %v1907_v50, 0.0 }
 0x796   :  { %v1306_v41 = vpop.f32.mrb[20].mxu1 }
 0x797   :  { %v1791_v42 = vpop.f32.mrb[21].mxu1  ;;  %v1315_v43 = vsel %vm362_vm1, %v1306_v41, -inf }
 0x798   :  { %1316 = vmax.xlane.f32.xlu1 %v1315_v43  ;;  %v1309_v13 = vpop.f32.mrb[22].mxu1 }
 0x799   :  { %v1792_v44 = vpop.f32.mrb[23].mxu1 }
 0x79a   :  { %v1391_v45 = vpop.f32.mrb[24].mxu0 }
 0x79b   :  { %v1797_v47 = vpop.f32.mrb[25].mxu0  ;;  %v1400_v49 = vsel %vm362_vm1, %v1391_v45, -inf }
 0x79c   :  { %370 = vadd.xlane.f32.xlu1 %v369_v4  ;;  %1401 = vmax.xlane.f32.xlu0 %v1400_v49  ;;  %v1394_v51 = vpop.f32.mrb[26].mxu0 }
 0x79d   :  { %v1798_v52 = vpop.f32.mrb[27].mxu0 }
 0x7a0   :  { %1005 = vadd.xlane.f32.xlu1 %v1004_v53  ;;  %688 = vadd.xlane.f32.xlu0 %v687_v54 }
 0x825   :  { %v1317_v55 = vpop.xlane.xlu1 %1316 }
 0x826   :  { %v1318_v56 = vsub.f32 %v1306_v41, %v1317_v55 }
 0x828   :  { %v1319_v57 = vmul.f32 1.442695, %v1318_v56 }
 0x829   :  { %v1402_v59 = vpop.xlane.xlu0 %1401  ;;  %v371_v31 = vpop.xlane.xlu1 %370 }
 0x82a   :  { %1908 = vpow2.f32 %v1319_v57  ;;  %v1403_v60 = vsub.f32 %v1391_v45, %v1402_v59 }
 0x82c   :  { %v1404_v61 = vmul.f32 1.442695, %v1403_v60 }
 0x82d   :  { %v1006_v20 = vpop.xlane.xlu1 %1005  ;;  %v689_v6 = vpop.xlane.xlu0 %688 }
 0x82e   :  { %1910 = vpow2.f32 %v1404_v61 }
 0x82f   :  { %1912 = vlog2.f32 %v371_v31 }
 0x830   :  { %1914 = vlog2.f32 %v1006_v20 }
 0x831   :  { %1916 = vlog2.f32 %v689_v6 }
 0x834   :  { %v1909_v62 = vpop.eup %1908 }
 0x835   :  { %v1321_v63 = vsel %vm362_vm1, %v1909_v62, 0.0 }
 0x836   :  { %1322 = vadd.xlane.f32.xlu0 %v1321_v63 }
 0x838   :  { %v1911_v1 = vpop.eup %1910 }
 0x839   :  { %v1406_v0 = vsel %vm362_vm1, %v1911_v1, 0.0  ;;  %v1913_v7 = vpop.eup %1912 }
 0x83a   :  { %360 = vadd.xlane.f32.xlu0 %v2201_v58  ;;  %1407 = vadd.xlane.f32.xlu1 %v1406_v0  ;;  %v1915_v58 = vpop.eup %1914  ;;  %v373_v8 = vmul.f32 0.6931472, %v1913_v7 }
 0x83b   :  { %v1917_v9 = vpop.eup %1916  ;;  %v1008_v37 = vmul.f32 0.6931472, %v1915_v58 }
 0x83c   :  { %v691_v40 = vmul.f32 0.6931472, %v1917_v9 }
 0x83d   :  { %v1009_v17 = vadd.f32 %v1008_v37, %v2346_v32 }
 0x83e   :  { %996 = vadd.xlane.f32.xlu0 %v995_v2  ;;  %679 = vadd.xlane.f32.xlu1 %v2252_v48  ;;  %v374_v48 = vadd.f32 %v373_v8, %v2340_v29  ;;  %v692_v15 = vadd.f32 %v691_v40, %v2342_v21 }
 0x842   :  { %1398 = vadd.xlane.f32.xlu0 %v1397_v3  ;;  %1313 = vadd.xlane.f32.xlu1 %v1312_v5 }
 0x8c3   :  { %v1323_v10 = vpop.xlane.xlu0 %1322 }
 0x8c4   :  { %1918 = vlog2.f32 %v1323_v10 }
 0x8c7   :  { %v1408_v11 = vpop.xlane.xlu1 %1407  ;;  %v361_v12 = vpop.xlane.xlu0 %360 }
 0x8c8   :  { %1920 = vlog2.f32 %v1408_v11  ;;  %v375_v14 = vsub.f32 %v374_v48, %v361_v12 }
 0x8ca   :  { %v377_v16 = vsel %vm376_vm2, %v375_v14, 0.0 }
 0x8cb   :  { %v680_v18 = vpop.xlane.xlu1 %679  ;;  %378 = vadd.xlane.f32.xlu1 %v377_v16  ;;  %v997_v19 = vpop.xlane.xlu0 %996 }
 0x8cc   :  { %v693_v22 = vsub.f32 %v692_v15, %v680_v18  ;;  %v1010_v24 = vsub.f32 %v1009_v17, %v997_v19 }
 0x8ce   :  { %v1919_v25 = vpop.eup %1918  ;;  %v694_v27 = vsel %vm376_vm2, %v693_v22, 0.0  ;;  %v1011_v28 = vsel %vm376_vm2, %v1010_v24, 0.0 }
 0x8cf   :  { %v1325_v35 = vmul.f32 0.6931472, %v1919_v25  ;;  %695 = vadd.xlane.f32.xlu0 %v694_v27  ;;  %1012 = vadd.xlane.f32.xlu1 %v1011_v28  ;;  %v1314_v21 = vpop.xlane.xlu1 %1313  ;;  %v1399_v36 = vpop.xlane.xlu0 %1398 }
 0x8d1   :  { %v1326_v23 = vadd.f32 %v1325_v35, %v1317_v55 }
 0x8d2   :  { %v1921_v29 = vpop.eup %1920 }
 0x8d3   :  { %v1410_v30 = vmul.f32 0.6931472, %v1921_v29  ;;  %v1327_v34 = vsub.f32 %v1326_v23, %v1314_v21 }
 0x8d5   :  { %v1411_v26 = vadd.f32 %v1410_v30, %v1402_v59  ;;  %v1328_v32 = vsel %vm376_vm2, %v1327_v34, 0.0 }
 0x8d6   :  { %1329 = vadd.xlane.f32.xlu0 %v1328_v32 }
 0x8d7   :  { %v1412_v38 = vsub.f32 %v1411_v26, %v1399_v36 }
 0x8d9   :  { %v1413_v39 = vsel %vm376_vm2, %v1412_v38, 0.0 }
 0x8da   :  { %1414 = vadd.xlane.f32.xlu1 %v1413_v39 }
 0x958   :  { %v379_v41 = vpop.xlane.xlu1 %378 }
 0x959   :  { %v380_v42 = vrot.slane %v379_v41, 4 }
 0x95b   :  { %v381_v43 = vadd.f32 %v380_v42, %v379_v41 }
 0x95c   :  { %v1013_v33 = vpop.xlane.xlu1 %1012  ;;  %v696_v13 = vpop.xlane.xlu0 %695 }
 0x95d   :  { %v382_v44 = vrot.slane %v381_v43, 2  ;;  %v1014_v45 = vrot.slane %v1013_v33, 4  ;;  %v697_v46 = vrot.slane %v696_v13, 4 }
 0x95f   :  { %v1015_v47 = vadd.f32 %v1014_v45, %v1013_v33  ;;  %v698_v4 = vadd.f32 %v697_v46, %v696_v13  ;;  %v383_v49 = vadd.f32 %v382_v44, %v381_v43 }
 0x961   :  { %v1016_v50 = vrot.slane %v1015_v47, 2  ;;  %v699_v51 = vrot.slane %v698_v4, 2  ;;  %v384_v52 = vrot.slane %v383_v49, 1 }
 0x963   :  { %v1330_v53 = vpop.xlane.xlu0 %1329  ;;  %v385_v54 = vadd.f32 %v384_v52, %v383_v49  ;;  %v700_v55 = vadd.f32 %v699_v51, %v698_v4  ;;  %v1017_v56 = vadd.f32 %v1016_v50, %v1015_v47 }
 0x964   :  { %v1331_v57 = vrot.slane %v1330_v53, 4 }
 0x965   :  { %1799 = vpush %v385_v54  ;;  %v701_v59 = vrot.slane %v700_v55, 1  ;;  %v1018_v60 = vrot.slane %v1017_v56, 1 }
 0x966   :  { %v1332_v61 = vadd.f32 %v1331_v57, %v1330_v53 }
 0x967   :  { %v1415_v62 = vpop.xlane.xlu1 %1414  ;;  %v702_v63 = vadd.f32 %v701_v59, %v700_v55  ;;  %v1019_v1 = vadd.f32 %v1018_v60, %v1017_v56 }
 0x968   :  { %v1333_v0 = vrot.slane %v1332_v61, 2  ;;  %v1416_v2 = vrot.slane %v1415_v62, 4 }
 0x969   :  { %1801 = vpush %v702_v63 }
 0x96a   :  { %v1334_v3 = vadd.f32 %v1333_v0, %v1332_v61  ;;  %v1417_v5 = vadd.f32 %v1416_v2, %v1415_v62  ;;  %1803 = vpush %v1019_v1 }
 0x96c   :  { %v1418_v31 = vrot.slane %v1417_v5, 2  ;;  %v1335_v20 = vrot.slane %v1334_v3, 1 }
 0x96e   :  { %v1419_v6 = vadd.f32 %v1418_v31, %v1417_v5  ;;  %v1336_v7 = vadd.f32 %v1335_v20, %v1334_v3 }
 0x970   :  { %1805 = vpush %v1336_v7  ;;  %v1420_v58 = vrot.slane %v1419_v6, 1 }
 0x972   :  { %v1421_v8 = vadd.f32 %v1420_v58, %v1419_v6 }
 0x974   :  { %1807 = vpush %v1421_v8 }
 0x996   :  { %s1800_s5 = spop %1799 }
 0x997   :  { %s389_s12 = smul.f32 0.125, %s1800_s5 }
 0x99a   :  { %s1802_s0 = spop %1801 }
 0x99b   :  { %s706_s24 = smul.f32 0.125, %s1802_s0  ;;  %s1804_s13 = spop %1803 }
 0x99c   :  { %s1023_s15 = smul.f32 0.125, %s1804_s13 }
 0x99d   :  { %s707_s14 = sadd.f32 %s706_s24, %s389_s12 }
 0x99f   :  { %s1024_s17 = sadd.f32 %s1023_s15, %s707_s14 }
 0x9a1   :  { %s1806_s16 = spop %1805 }
 0x9a2   :  { %s1340_s18 = smul.f32 0.125, %s1806_s16 }
 0x9a4   :  { %s1341_s19 = sadd.f32 %s1340_s18, %s1024_s17 }
 0x9a5   :  { %s1808_s20 = spop %1807 }
 0x9a6   :  { %s1428_s3 = smul.f32 0.25, %s1341_s19 }
 0x9a7   :  { %s1425_s1 = smul.f32 0.125, %s1808_s20 }
 0x9a8   :  { %s1429_s4 = smul.f32 0.01, %s1428_s3 }
 0x9aa   :  { %s1430_s9 = sadd.f32 %s1429_s4, %s1425_s1 }
 0x9ac   :  { %1432 = sst [smem:[#allocation10]] %s1430_s9 }
 0x9ad   :  { %2019 = shalt.err (!%p2016_p6)
}
 0x9ae   :  { %s2036_s28 = smov [#allocation10]  }
 0x9af   :  { %1440 = dma.smem_to_hbm %s2036_s28, 16, %s2389_s6, [#allocation4]  }
 0x9b0   :  { %2026 = dma.done.wait [#allocation4], 16  }
 0x9b1   :  { %2027 = vsyncadd [#allocation4], 4294967280 }
 0x9b2   :  { %1444 = sfence }
 0x9b3   :  { %1445 = vsyncpa [#allocation3], 1 }
 0x9b4   :  { %1446 = vsyncpa [#allocation6], 1 }
 0x9b5   :  { %1447 = vsyncpa [#allocation9], 1 }
 0x9b6   :  { %1448 = vsyncpa [#allocation4], 1 }

</bundles_post_ra>
